<compile_context>
chip_gen: v7x
topology: tpu7x:2x2x1
jax: 0.10.0
libtpu: 0.0.40
codegen_flags: <defaults>
</compile_context>

<pallas_src>
import functools

import jax
import jax.numpy as jnp
from jax.experimental import pallas as pl
from jax.experimental.pallas import tpu as pltpu

NEG_SLOPE = 0.01   # PyTorch LeakyReLU default negative_slope
K_AGENTS = 5       # paynet input dim -> data.shape[2] must be 5
F_IN = 8           # features input dim -> data.shape[3] must be 8
H1 = 16            # paynet hidden-1 width (output of the fused layer)


def _leaky(h):
    # maximum(h, a*h) == leaky_relu(h) for 0 < a < 1 (2 VPU ops, no select).
    return jnp.maximum(h, NEG_SLOPE * h)


def _round_up(x, m):
    return (x + m - 1) // m * m


def _block_diag(w, n):
    """Stack weight `w` (fi, fo) n times block-diagonally -> (n*fi, n*fo)."""
    fi, fo = w.shape
    out = jnp.zeros((n * fi, n * fo), w.dtype)
    for k in range(n):
        out = out.at[k * fi:(k + 1) * fi, k * fo:(k + 1) * fo].set(w)
    return out


# ------------------------------- kernel ------------------------------------
def _dense(a, w_ref, b_ref):
    # Matmul in the weight dtype (bf16 fast path), f32 accumulation, then
    # bias add in the bias dtype (bf16 activations on v6e/v7x, f32 otherwise).
    y = jnp.dot(a.astype(w_ref.dtype), w_ref[...],
                preferred_element_type=jnp.float32)
    return y.astype(b_ref.dtype) + b_ref[...]


def wsnet_kernel(x_ref, *refs, pair_pack, approx_recip):
    out_ref = refs[-1]
    if pair_pack:
        (w1, b1, w2, b2, w3p, b3p, w3s, b3s, w4p, b4p, w4s, b4s,
         wf_ref, fbias, pw2, pb2, pw3, pb3, pw4, pb4, pw5, pb5) = refs[:-1]
    else:
        (w1, b1, w2, b2, w3s, b3s, w4s, b4s,
         wf_ref, fbias, pw2, pb2, pw3, pb3, pw4, pb4, pw5, pb5) = refs[:-1]

    tm = x_ref.shape[0]
    x = x_ref[...]                                     # (tm, 40)

    # features L1/L2 for all 5 agents at once (5-wide block-diagonal weights).
    h = _leaky(_dense(x, w1, b1))                      # (tm, 80)
    h = _leaky(_dense(h, w2, b2))                      # (tm, 320)

    wf = wf_ref[...]                                   # (320, 16) fused L5+pay-L1
    p = jnp.zeros((tm, H1), jnp.float32)

    def tail(hin, w3, b3, w4, b4, wf_blk):
        t = _leaky(_dense(hin, w3, b3))
        t = _leaky(_dense(t, w4, b4))
        return jnp.dot(t.astype(wf_blk.dtype), wf_blk,
                       preferred_element_type=jnp.float32)

    if pair_pack:
        # agent pairs (0,1) and (2,3) use 2-wide block-diag L3/L4 weights
        # ((128,256) / (256,128) dots -> native 256-wide MXU on v6e/v7x).
        for g in range(2):
            p = p + tail(h[:, 128 * g:128 * (g + 1)],
                         w3p, b3p, w4p, b4p, wf[128 * g:128 * (g + 1), :])
        # agent 4 runs the unpacked (64,128)/(128,64) path.
        p = p + tail(h[:, 256:320], w3s, b3s, w4s, b4s, wf[256:320, :])
    else:
        for k in range(K_AGENTS):
            p = p + tail(h[:, 64 * k:64 * (k + 1)],
                         w3s, b3s, w4s, b4s, wf[64 * k:64 * (k + 1), :])

    # paynet: fused layer-1 bias + activation, then layers 2..4 and folded L5.
    p = _leaky(p.astype(fbias.dtype) + fbias[...])     # (tm, 16)
    p = _leaky(_dense(p, pw2, pb2))
    p = _leaky(_dense(p, pw3, pb3))
    p = _leaky(_dense(p, pw4, pb4))
    p = jnp.dot(p.astype(pw5.dtype), pw5[...],
                preferred_element_type=jnp.float32) + pb5[...]   # (tm, 5), f32

    # Zigmoid 1/(0.5+exp(-zw*x)); zw already folded into pw5/pb5.
    z = 0.5 + jnp.exp(-p)
    if approx_recip:
        out_ref[...] = pl.reciprocal(z, approx=True)   # EUP slot, ~free
    else:
        out_ref[...] = 1.0 / z


# ------------------------------- wrapper ------------------------------------
def wsnet_paym_forward(data, params, *, block_m=2048, min_tiles=2,
                       use_bf16_matmul=True, bf16_activations=None,
                       pair_pack_l34=True, approx_recip=True):
    """data: (B, J, K=5, F=8) -> (B, J, K) float32.

    Defaults target v6e/v7x (bf16 matmuls + bf16 activations + pairwise L3/L4
    packing).  For v5e set bf16_activations=False and pair_pack_l34=False.
    """
    B, J, K, F = data.shape
    assert K == K_AGENTS and F == F_IN
    if bf16_activations is None:
        bf16_activations = use_bf16_matmul
    mm_dtype = jnp.bfloat16 if use_bf16_matmul else jnp.float32
    act_dtype = jnp.bfloat16 if bf16_activations else jnp.float32
    M = B * J

    (fw1, fb1, fw2, fb2, fw3, fb3, fw4, fb4, fw5, fb5,
     pw1, pb1, pw2, pb2, pw3, pb3, pw4, pb4, pw5, pb5, zw) = params

    # L1/L2 packed 5-wide block-diagonal over the agents.
    w1bd = _block_diag(fw1, K_AGENTS)                  # (40, 80)
    b1bd = jnp.tile(fb1, (1, K_AGENTS))                # (1, 80)
    w2bd = _block_diag(fw2, K_AGENTS)                  # (80, 320)
    b2bd = jnp.tile(fb2, (1, K_AGENTS))                # (1, 320)

    # Fuse features Linear(64,1) with paynet Linear(5,16); stack over agents.
    wf = jnp.concatenate([fw5 * pw1[k:k + 1, :] for k in range(K_AGENTS)],
                         axis=0)                                          # (320,16)
    fbias = fb5[0, 0] * jnp.sum(pw1, axis=0, keepdims=True) + pb1         # (1, 16)

    # Fold the (frozen) Zigmoid weight into paynet L5.
    pw5z = pw5 * zw[0, 0]
    pb5z = pb5 * zw[0, 0]

    cw = lambda a: a.astype(mm_dtype)     # matmul operands
    cb = lambda a: a.astype(act_dtype)    # bias / elementwise dtype

    if pair_pack_l34:
        w3p = _block_diag(fw3, 2); b3p = jnp.tile(fb3, (1, 2))   # (128,256)/(1,256)
        w4p = _block_diag(fw4, 2); b4p = jnp.tile(fb4, (1, 2))   # (256,128)/(1,128)
        kernel_args = (cw(w1bd), cb(b1bd), cw(w2bd), cb(b2bd),
                       cw(w3p), cb(b3p), cw(fw3), cb(fb3),
                       cw(w4p), cb(b4p), cw(fw4), cb(fb4),
                       cw(wf), cb(fbias),
                       cw(pw2), cb(pb2), cw(pw3), cb(pb3), cw(pw4), cb(pb4),
                       cw(pw5z), pb5z.astype(jnp.float32))
    else:
        kernel_args = (cw(w1bd), cb(b1bd), cw(w2bd), cb(b2bd),
                       cw(fw3), cb(fb3), cw(fw4), cb(fb4),
                       cw(wf), cb(fbias),
                       cw(pw2), cb(pb2), cw(pw3), cb(pb3), cw(pw4), cb(pb4),
                       cw(pw5z), pb5z.astype(jnp.float32))

    # Flat (M, 40) slab: contiguous DMA, static lane slices per agent.
    x = data.reshape(M, K * F).astype(jnp.float32)

    # Adaptive row tiling: >=min_tiles tiles (v7x dual TensorCore) but padding
    # waste bounded by 8-row granularity (padded rows run the full MLP).
    n_tiles = max(min_tiles, pl.cdiv(M, block_m))
    tm = _round_up(pl.cdiv(M, n_tiles), 8)
    n_tiles = pl.cdiv(M, tm)            # never emit all-padding tiles
    m_pad = n_tiles * tm
    if m_pad != M:
        x = jnp.pad(x, ((0, m_pad - M), (0, 0)))

    # Advisory cost hint (compute-bound); counts the packed (zero-padded) MACs.
    if pair_pack_l34:
        l34_macs = 2 * (128 * 256 + 256 * 128) + (64 * 128 + 128 * 64)
    else:
        l34_macs = K_AGENTS * (64 * 128 + 128 * 64)
    macs_per_row = (40 * 80 + 80 * 320 + l34_macs + 320 * H1
                    + 16 * 64 + 64 * 128 + 128 * 64 + 64 * K_AGENTS)
    param_bytes = sum(int(a.size) * a.dtype.itemsize for a in kernel_args)
    cost = pl.CostEstimate(
        flops=2 * macs_per_row * m_pad,
        transcendentals=K_AGENTS * m_pad,
        bytes_accessed=int(x.size) * 4 + m_pad * K_AGENTS * 4 + param_bytes)

    in_specs = [pl.BlockSpec((tm, K * F), lambda i: (i, 0))]
    in_specs += [pl.BlockSpec(a.shape, lambda i: (0, 0)) for a in kernel_args]

    out = pl.pallas_call(
        functools.partial(wsnet_kernel, pair_pack=pair_pack_l34,
                          approx_recip=approx_recip),
        out_shape=jax.ShapeDtypeStruct((m_pad, K_AGENTS), jnp.float32),
        grid=(n_tiles,),
        in_specs=in_specs,
        out_specs=pl.BlockSpec((tm, K_AGENTS), lambda i: (i, 0)),
        compiler_params=pltpu.CompilerParams(
            dimension_semantics=("parallel",),
            vmem_limit_bytes=32 * 1024 * 1024),
        cost_estimate=cost,
    )(x, *kernel_args)

    return out[:M].reshape(B, J, K_AGENTS)


# -------------------- deterministic parameter construction ------------------
def _init_linear(key, fan_in, fan_out):
    # PyTorch nn.Linear default: U(-1/sqrt(fan_in), 1/sqrt(fan_in)); weights
    # stored transposed as (in, out) so the kernel does x @ W + b.
    kw, kb = jax.random.split(key)
    bound = fan_in ** -0.5
    w = jax.random.uniform(kw, (fan_in, fan_out), jnp.float32, -bound, bound)
    b = jax.random.uniform(kb, (1, fan_out), jnp.float32, -bound, bound)
    return w, b


def make_params(key):
    feat_dims = [(8, 16), (16, 64), (64, 128), (128, 64), (64, 1)]
    pay_dims = [(5, 16), (16, 64), (64, 128), (128, 64), (64, 5)]
    params = []
    keys = jax.random.split(key, len(feat_dims) + len(pay_dims))
    for i, (fi, fo) in enumerate(feat_dims):
        w, b = _init_linear(keys[i], fi, fo)
        params += [w, b]
    for i, (fi, fo) in enumerate(pay_dims):
        w, b = _init_linear(keys[len(feat_dims) + i], fi, fo)
        params += [w, b]
    zw = jnp.ones((1, 1), jnp.float32)   # Zigmoid.weight filled with 1.0
    params.append(zw)
    return params


# -------------------- plain-JAX reference (unfused, same math) ---------------
def reference_forward(data, params):
    (fw1, fb1, fw2, fb2, fw3, fb3, fw4, fb4, fw5, fb5,
     pw1, pb1, pw2, pb2, pw3, pb3, pw4, pb4, pw5, pb5, zw) = params
    B, J, K, F = data.shape

    def lrelu(h):
        return jnp.where(h > 0, h, NEG_SLOPE * h)

    x = data.reshape(B * J * K, F).astype(jnp.float32)
    h = lrelu(x @ fw1 + fb1)
    h = lrelu(h @ fw2 + fb2)
    h = lrelu(h @ fw3 + fb3)
    h = lrelu(h @ fw4 + fb4)
    agents = (h @ fw5 + fb5).reshape(B * J, K)        # per-(b,j) row of K scalars
    p = lrelu(agents @ pw1 + pb1)
    p = lrelu(p @ pw2 + pb2)
    p = lrelu(p @ pw3 + pb3)
    p = lrelu(p @ pw4 + pb4)
    p = p @ pw5 + pb5
    p = 1.0 / (0.5 + jnp.exp(-zw[0, 0] * p))
    return p.reshape(B, J, K)


if __name__ == "__main__":
    key = jax.random.PRNGKey(0)
    k_data, k_params, k_data2 = jax.random.split(key, 3)

    params = make_params(k_params)

    # Small shape (M = 8, single tile): exact f32 path.
    B, J = 2, 4
    data = jax.random.normal(k_data, (B, J, K_AGENTS, F_IN), jnp.float32)
    ref = reference_forward(data, params)
    out_f32 = jax.block_until_ready(
        wsnet_paym_forward(data, params, use_bf16_matmul=False,
                           approx_recip=False))
    assert out_f32.shape == (B, J, K_AGENTS)
    assert jnp.allclose(out_f32, ref, atol=1e-4, rtol=1e-4), "f32 mismatch (small)"

    # Larger shape (M = 296 -> 2 tiles of 152 + 8 pad rows): f32, pairwise L3/L4.
    B2, J2 = 8, 37
    data2 = jax.random.normal(k_data2, (B2, J2, K_AGENTS, F_IN), jnp.float32)
    ref2 = reference_forward(data2, params)
    out2 = jax.block_until_ready(
        wsnet_paym_forward(data2, params, block_m=256, use_bf16_matmul=False,
                           approx_recip=False))
    assert out2.shape == (B2, J2, K_AGENTS)
    assert jnp.allclose(out2, ref2, atol=1e-4, rtol=1e-4), "f32 mismatch (pairs)"

    # f32, per-agent L3/L4 path (v5e-style configuration).
    out2b = jax.block_until_ready(
        wsnet_paym_forward(data2, params, block_m=256, use_bf16_matmul=False,
                           pair_pack_l34=False, approx_recip=False))
    assert jnp.allclose(out2b, ref2, atol=1e-4, rtol=1e-4), "f32 mismatch (no pairs)"

    # Default fast path: bf16 matmuls + bf16 activations + pair packing +
    # approx reciprocal.  Compared loosely against the f32 reference.
    out_fast = jax.block_until_ready(wsnet_paym_forward(data2, params))
    assert out_fast.shape == (B2, J2, K_AGENTS)
    assert float(jnp.max(jnp.abs(out_fast - ref2))) < 0.15, "bf16 path diverged"

    print("KERNEL_OK")
</pallas_src>

<mosaic_0001>
module attributes {stable_mosaic.version = 11 : i64} {
  func.func @wsnet_kernel(%arg0: i32, %arg1: memref<8x40xf32, #tpu.memory_space<vmem>>, %arg2: memref<40x80xf32, #tpu.memory_space<vmem>>, %arg3: memref<1x80xf32, #tpu.memory_space<vmem>>, %arg4: memref<80x320xf32, #tpu.memory_space<vmem>>, %arg5: memref<1x320xf32, #tpu.memory_space<vmem>>, %arg6: memref<128x256xf32, #tpu.memory_space<vmem>>, %arg7: memref<1x256xf32, #tpu.memory_space<vmem>>, %arg8: memref<64x128xf32, #tpu.memory_space<vmem>>, %arg9: memref<1x128xf32, #tpu.memory_space<vmem>>, %arg10: memref<256x128xf32, #tpu.memory_space<vmem>>, %arg11: memref<1x128xf32, #tpu.memory_space<vmem>>, %arg12: memref<128x64xf32, #tpu.memory_space<vmem>>, %arg13: memref<1x64xf32, #tpu.memory_space<vmem>>, %arg14: memref<320x16xf32, #tpu.memory_space<vmem>>, %arg15: memref<1x16xf32, #tpu.memory_space<vmem>>, %arg16: memref<16x64xf32, #tpu.memory_space<vmem>>, %arg17: memref<1x64xf32, #tpu.memory_space<vmem>>, %arg18: memref<64x128xf32, #tpu.memory_space<vmem>>, %arg19: memref<1x128xf32, #tpu.memory_space<vmem>>, %arg20: memref<128x64xf32, #tpu.memory_space<vmem>>, %arg21: memref<1x64xf32, #tpu.memory_space<vmem>>, %arg22: memref<64x5xf32, #tpu.memory_space<vmem>>, %arg23: memref<1x5xf32, #tpu.memory_space<vmem>>, %arg24: memref<8x5xf32, #tpu.memory_space<vmem>>) attributes {dimension_semantics = [#tpu.dimension_semantics<parallel>], iteration_bounds = array<i64: 1>, scalar_prefetch = 0 : i64, scratch_operands = 0 : i64, tpu.core_type = #tpu.core_type<tc>, window_params = [{transform_indices = @transform_0, window_bounds = array<i64: 8, 40>}, {pipeline_mode = #tpu.pipeline_mode<synchronous>, transform_indices = @transform_1, window_bounds = array<i64: 40, 80>}, {pipeline_mode = #tpu.pipeline_mode<synchronous>, transform_indices = @transform_2, window_bounds = array<i64: 1, 80>}, {pipeline_mode = #tpu.pipeline_mode<synchronous>, transform_indices = @transform_3, window_bounds = array<i64: 80, 320>}, {pipeline_mode = #tpu.pipeline_mode<synchronous>, transform_indices = @transform_4, window_bounds = array<i64: 1, 320>}, {pipeline_mode = #tpu.pipeline_mode<synchronous>, transform_indices = @transform_5, window_bounds = array<i64: 128, 256>}, {pipeline_mode = #tpu.pipeline_mode<synchronous>, transform_indices = @transform_6, window_bounds = array<i64: 1, 256>}, {pipeline_mode = #tpu.pipeline_mode<synchronous>, transform_indices = @transform_7, window_bounds = array<i64: 64, 128>}, {pipeline_mode = #tpu.pipeline_mode<synchronous>, transform_indices = @transform_8, window_bounds = array<i64: 1, 128>}, {pipeline_mode = #tpu.pipeline_mode<synchronous>, transform_indices = @transform_9, window_bounds = array<i64: 256, 128>}, {pipeline_mode = #tpu.pipeline_mode<synchronous>, transform_indices = @transform_10, window_bounds = array<i64: 1, 128>}, {pipeline_mode = #tpu.pipeline_mode<synchronous>, transform_indices = @transform_11, window_bounds = array<i64: 128, 64>}, {pipeline_mode = #tpu.pipeline_mode<synchronous>, transform_indices = @transform_12, window_bounds = array<i64: 1, 64>}, {pipeline_mode = #tpu.pipeline_mode<synchronous>, transform_indices = @transform_13, window_bounds = array<i64: 320, 16>}, {pipeline_mode = #tpu.pipeline_mode<synchronous>, transform_indices = @transform_14, window_bounds = array<i64: 1, 16>}, {pipeline_mode = #tpu.pipeline_mode<synchronous>, transform_indices = @transform_15, window_bounds = array<i64: 16, 64>}, {pipeline_mode = #tpu.pipeline_mode<synchronous>, transform_indices = @transform_16, window_bounds = array<i64: 1, 64>}, {pipeline_mode = #tpu.pipeline_mode<synchronous>, transform_indices = @transform_17, window_bounds = array<i64: 64, 128>}, {pipeline_mode = #tpu.pipeline_mode<synchronous>, transform_indices = @transform_18, window_bounds = array<i64: 1, 128>}, {pipeline_mode = #tpu.pipeline_mode<synchronous>, transform_indices = @transform_19, window_bounds = array<i64: 128, 64>}, {pipeline_mode = #tpu.pipeline_mode<synchronous>, transform_indices = @transform_20, window_bounds = array<i64: 1, 64>}, {pipeline_mode = #tpu.pipeline_mode<synchronous>, transform_indices = @transform_21, window_bounds = array<i64: 64, 5>}, {pipeline_mode = #tpu.pipeline_mode<synchronous>, transform_indices = @transform_22, window_bounds = array<i64: 1, 5>}, {transform_indices = @transform_23, window_bounds = array<i64: 8, 5>}]} {
    %c0 = arith.constant 0 : index
    %c0_0 = arith.constant 0 : index
    %0 = vector.load %arg1[%c0, %c0_0] : memref<8x40xf32, #tpu.memory_space<vmem>>, vector<8x40xf32>
    %c0_1 = arith.constant 0 : index
    %c0_2 = arith.constant 0 : index
    %1 = vector.load %arg2[%c0_1, %c0_2] : memref<40x80xf32, #tpu.memory_space<vmem>>, vector<40x80xf32>
    %cst = arith.constant dense<0.000000e+00> : vector<8x80xf32>
    %2 = tpu.matmul %0, %1, %cst {dimension_numbers = #tpu.dot_dimension_numbers<[1], [0], [0], [1], [0, 0, 1, 1], [], []>} : vector<8x40xf32>, vector<40x80xf32>, vector<8x80xf32> -> vector<8x80xf32>
    %c0_3 = arith.constant 0 : index
    %c0_4 = arith.constant 0 : index
    %3 = vector.load %arg3[%c0_3, %c0_4] : memref<1x80xf32, #tpu.memory_space<vmem>>, vector<1x80xf32>
    %4 = vector.broadcast %3 : vector<1x80xf32> to vector<8x80xf32>
    %5 = arith.addf %2, %4 : vector<8x80xf32>
    %cst_5 = arith.constant 0.00999999977 : f32
    %6 = vector.broadcast %cst_5 : f32 to vector<8x80xf32>
    %7 = arith.mulf %6, %5 : vector<8x80xf32>
    %8 = arith.maximumf %5, %7 : vector<8x80xf32>
    %c0_6 = arith.constant 0 : index
    %c0_7 = arith.constant 0 : index
    %9 = vector.load %arg4[%c0_6, %c0_7] : memref<80x320xf32, #tpu.memory_space<vmem>>, vector<80x320xf32>
    %cst_8 = arith.constant dense<0.000000e+00> : vector<8x320xf32>
    %10 = tpu.matmul %8, %9, %cst_8 {dimension_numbers = #tpu.dot_dimension_numbers<[1], [0], [0], [1], [0, 0, 1, 1], [], []>} : vector<8x80xf32>, vector<80x320xf32>, vector<8x320xf32> -> vector<8x320xf32>
    %c0_9 = arith.constant 0 : index
    %c0_10 = arith.constant 0 : index
    %11 = vector.load %arg5[%c0_9, %c0_10] : memref<1x320xf32, #tpu.memory_space<vmem>>, vector<1x320xf32>
    %12 = vector.broadcast %11 : vector<1x320xf32> to vector<8x320xf32>
    %13 = arith.addf %10, %12 : vector<8x320xf32>
    %cst_11 = arith.constant 0.00999999977 : f32
    %14 = vector.broadcast %cst_11 : f32 to vector<8x320xf32>
    %15 = arith.mulf %14, %13 : vector<8x320xf32>
    %16 = arith.maximumf %13, %15 : vector<8x320xf32>
    %c0_12 = arith.constant 0 : index
    %c0_13 = arith.constant 0 : index
    %17 = vector.load %arg14[%c0_12, %c0_13] : memref<320x16xf32, #tpu.memory_space<vmem>>, vector<320x16xf32>
    %cst_14 = arith.constant 0.000000e+00 : f32
    %18 = vector.broadcast %cst_14 : f32 to vector<8x16xf32>
    %19 = vector.extract_strided_slice %16 {offsets = [0, 0], sizes = [8, 128], strides = [1, 1]} : vector<8x320xf32> to vector<8x128xf32>
    %20 = vector.extract_strided_slice %17 {offsets = [0, 0], sizes = [128, 16], strides = [1, 1]} : vector<320x16xf32> to vector<128x16xf32>
    %c0_15 = arith.constant 0 : index
    %c0_16 = arith.constant 0 : index
    %21 = vector.load %arg6[%c0_15, %c0_16] : memref<128x256xf32, #tpu.memory_space<vmem>>, vector<128x256xf32>
    %cst_17 = arith.constant dense<0.000000e+00> : vector<8x256xf32>
    %22 = tpu.matmul %19, %21, %cst_17 {dimension_numbers = #tpu.dot_dimension_numbers<[1], [0], [0], [1], [0, 0, 1, 1], [], []>} : vector<8x128xf32>, vector<128x256xf32>, vector<8x256xf32> -> vector<8x256xf32>
    %c0_18 = arith.constant 0 : index
    %c0_19 = arith.constant 0 : index
    %23 = vector.load %arg7[%c0_18, %c0_19] : memref<1x256xf32, #tpu.memory_space<vmem>>, vector<1x256xf32>
    %24 = vector.broadcast %23 : vector<1x256xf32> to vector<8x256xf32>
    %25 = arith.addf %22, %24 : vector<8x256xf32>
    %cst_20 = arith.constant 0.00999999977 : f32
    %26 = vector.broadcast %cst_20 : f32 to vector<8x256xf32>
    %27 = arith.mulf %26, %25 : vector<8x256xf32>
    %28 = arith.maximumf %25, %27 : vector<8x256xf32>
    %c0_21 = arith.constant 0 : index
    %c0_22 = arith.constant 0 : index
    %29 = vector.load %arg10[%c0_21, %c0_22] : memref<256x128xf32, #tpu.memory_space<vmem>>, vector<256x128xf32>
    %cst_23 = arith.constant dense<0.000000e+00> : vector<8x128xf32>
    %30 = tpu.matmul %28, %29, %cst_23 {dimension_numbers = #tpu.dot_dimension_numbers<[1], [0], [0], [1], [0, 0, 1, 1], [], []>} : vector<8x256xf32>, vector<256x128xf32>, vector<8x128xf32> -> vector<8x128xf32>
    %c0_24 = arith.constant 0 : index
    %c0_25 = arith.constant 0 : index
    %31 = vector.load %arg11[%c0_24, %c0_25] : memref<1x128xf32, #tpu.memory_space<vmem>>, vector<1x128xf32>
    %32 = vector.broadcast %31 : vector<1x128xf32> to vector<8x128xf32>
    %33 = arith.addf %30, %32 : vector<8x128xf32>
    %cst_26 = arith.constant 0.00999999977 : f32
    %34 = vector.broadcast %cst_26 : f32 to vector<8x128xf32>
    %35 = arith.mulf %34, %33 : vector<8x128xf32>
    %36 = arith.maximumf %33, %35 : vector<8x128xf32>
    %cst_27 = arith.constant dense<0.000000e+00> : vector<8x16xf32>
    %37 = tpu.matmul %36, %20, %cst_27 {dimension_numbers = #tpu.dot_dimension_numbers<[1], [0], [0], [1], [0, 0, 1, 1], [], []>} : vector<8x128xf32>, vector<128x16xf32>, vector<8x16xf32> -> vector<8x16xf32>
    %38 = arith.addf %18, %37 : vector<8x16xf32>
    %39 = vector.extract_strided_slice %16 {offsets = [0, 128], sizes = [8, 128], strides = [1, 1]} : vector<8x320xf32> to vector<8x128xf32>
    %40 = vector.extract_strided_slice %17 {offsets = [128, 0], sizes = [128, 16], strides = [1, 1]} : vector<320x16xf32> to vector<128x16xf32>
    %c0_28 = arith.constant 0 : index
    %c0_29 = arith.constant 0 : index
    %41 = vector.load %arg6[%c0_28, %c0_29] : memref<128x256xf32, #tpu.memory_space<vmem>>, vector<128x256xf32>
    %cst_30 = arith.constant dense<0.000000e+00> : vector<8x256xf32>
    %42 = tpu.matmul %39, %41, %cst_30 {dimension_numbers = #tpu.dot_dimension_numbers<[1], [0], [0], [1], [0, 0, 1, 1], [], []>} : vector<8x128xf32>, vector<128x256xf32>, vector<8x256xf32> -> vector<8x256xf32>
    %c0_31 = arith.constant 0 : index
    %c0_32 = arith.constant 0 : index
    %43 = vector.load %arg7[%c0_31, %c0_32] : memref<1x256xf32, #tpu.memory_space<vmem>>, vector<1x256xf32>
    %44 = vector.broadcast %43 : vector<1x256xf32> to vector<8x256xf32>
    %45 = arith.addf %42, %44 : vector<8x256xf32>
    %cst_33 = arith.constant 0.00999999977 : f32
    %46 = vector.broadcast %cst_33 : f32 to vector<8x256xf32>
    %47 = arith.mulf %46, %45 : vector<8x256xf32>
    %48 = arith.maximumf %45, %47 : vector<8x256xf32>
    %c0_34 = arith.constant 0 : index
    %c0_35 = arith.constant 0 : index
    %49 = vector.load %arg10[%c0_34, %c0_35] : memref<256x128xf32, #tpu.memory_space<vmem>>, vector<256x128xf32>
    %cst_36 = arith.constant dense<0.000000e+00> : vector<8x128xf32>
    %50 = tpu.matmul %48, %49, %cst_36 {dimension_numbers = #tpu.dot_dimension_numbers<[1], [0], [0], [1], [0, 0, 1, 1], [], []>} : vector<8x256xf32>, vector<256x128xf32>, vector<8x128xf32> -> vector<8x128xf32>
    %c0_37 = arith.constant 0 : index
    %c0_38 = arith.constant 0 : index
    %51 = vector.load %arg11[%c0_37, %c0_38] : memref<1x128xf32, #tpu.memory_space<vmem>>, vector<1x128xf32>
    %52 = vector.broadcast %51 : vector<1x128xf32> to vector<8x128xf32>
    %53 = arith.addf %50, %52 : vector<8x128xf32>
    %cst_39 = arith.constant 0.00999999977 : f32
    %54 = vector.broadcast %cst_39 : f32 to vector<8x128xf32>
    %55 = arith.mulf %54, %53 : vector<8x128xf32>
    %56 = arith.maximumf %53, %55 : vector<8x128xf32>
    %cst_40 = arith.constant dense<0.000000e+00> : vector<8x16xf32>
    %57 = tpu.matmul %56, %40, %cst_40 {dimension_numbers = #tpu.dot_dimension_numbers<[1], [0], [0], [1], [0, 0, 1, 1], [], []>} : vector<8x128xf32>, vector<128x16xf32>, vector<8x16xf32> -> vector<8x16xf32>
    %58 = arith.addf %38, %57 : vector<8x16xf32>
    %59 = vector.extract_strided_slice %16 {offsets = [0, 256], sizes = [8, 64], strides = [1, 1]} : vector<8x320xf32> to vector<8x64xf32>
    %60 = vector.extract_strided_slice %17 {offsets = [256, 0], sizes = [64, 16], strides = [1, 1]} : vector<320x16xf32> to vector<64x16xf32>
    %c0_41 = arith.constant 0 : index
    %c0_42 = arith.constant 0 : index
    %61 = vector.load %arg8[%c0_41, %c0_42] : memref<64x128xf32, #tpu.memory_space<vmem>>, vector<64x128xf32>
    %cst_43 = arith.constant dense<0.000000e+00> : vector<8x128xf32>
    %62 = tpu.matmul %59, %61, %cst_43 {dimension_numbers = #tpu.dot_dimension_numbers<[1], [0], [0], [1], [0, 0, 1, 1], [], []>} : vector<8x64xf32>, vector<64x128xf32>, vector<8x128xf32> -> vector<8x128xf32>
    %c0_44 = arith.constant 0 : index
    %c0_45 = arith.constant 0 : index
    %63 = vector.load %arg9[%c0_44, %c0_45] : memref<1x128xf32, #tpu.memory_space<vmem>>, vector<1x128xf32>
    %64 = vector.broadcast %63 : vector<1x128xf32> to vector<8x128xf32>
    %65 = arith.addf %62, %64 : vector<8x128xf32>
    %cst_46 = arith.constant 0.00999999977 : f32
    %66 = vector.broadcast %cst_46 : f32 to vector<8x128xf32>
    %67 = arith.mulf %66, %65 : vector<8x128xf32>
    %68 = arith.maximumf %65, %67 : vector<8x128xf32>
    %c0_47 = arith.constant 0 : index
    %c0_48 = arith.constant 0 : index
    %69 = vector.load %arg12[%c0_47, %c0_48] : memref<128x64xf32, #tpu.memory_space<vmem>>, vector<128x64xf32>
    %cst_49 = arith.constant dense<0.000000e+00> : vector<8x64xf32>
    %70 = tpu.matmul %68, %69, %cst_49 {dimension_numbers = #tpu.dot_dimension_numbers<[1], [0], [0], [1], [0, 0, 1, 1], [], []>} : vector<8x128xf32>, vector<128x64xf32>, vector<8x64xf32> -> vector<8x64xf32>
    %c0_50 = arith.constant 0 : index
    %c0_51 = arith.constant 0 : index
    %71 = vector.load %arg13[%c0_50, %c0_51] : memref<1x64xf32, #tpu.memory_space<vmem>>, vector<1x64xf32>
    %72 = vector.broadcast %71 : vector<1x64xf32> to vector<8x64xf32>
    %73 = arith.addf %70, %72 : vector<8x64xf32>
    %cst_52 = arith.constant 0.00999999977 : f32
    %74 = vector.broadcast %cst_52 : f32 to vector<8x64xf32>
    %75 = arith.mulf %74, %73 : vector<8x64xf32>
    %76 = arith.maximumf %73, %75 : vector<8x64xf32>
    %cst_53 = arith.constant dense<0.000000e+00> : vector<8x16xf32>
    %77 = tpu.matmul %76, %60, %cst_53 {dimension_numbers = #tpu.dot_dimension_numbers<[1], [0], [0], [1], [0, 0, 1, 1], [], []>} : vector<8x64xf32>, vector<64x16xf32>, vector<8x16xf32> -> vector<8x16xf32>
    %78 = arith.addf %58, %77 : vector<8x16xf32>
    %c0_54 = arith.constant 0 : index
    %c0_55 = arith.constant 0 : index
    %79 = vector.load %arg15[%c0_54, %c0_55] : memref<1x16xf32, #tpu.memory_space<vmem>>, vector<1x16xf32>
    %80 = vector.broadcast %79 : vector<1x16xf32> to vector<8x16xf32>
    %81 = arith.addf %78, %80 : vector<8x16xf32>
    %cst_56 = arith.constant 0.00999999977 : f32
    %82 = vector.broadcast %cst_56 : f32 to vector<8x16xf32>
    %83 = arith.mulf %82, %81 : vector<8x16xf32>
    %84 = arith.maximumf %81, %83 : vector<8x16xf32>
    %c0_57 = arith.constant 0 : index
    %c0_58 = arith.constant 0 : index
    %85 = vector.load %arg16[%c0_57, %c0_58] : memref<16x64xf32, #tpu.memory_space<vmem>>, vector<16x64xf32>
    %cst_59 = arith.constant dense<0.000000e+00> : vector<8x64xf32>
    %86 = tpu.matmul %84, %85, %cst_59 {dimension_numbers = #tpu.dot_dimension_numbers<[1], [0], [0], [1], [0, 0, 1, 1], [], []>} : vector<8x16xf32>, vector<16x64xf32>, vector<8x64xf32> -> vector<8x64xf32>
    %c0_60 = arith.constant 0 : index
    %c0_61 = arith.constant 0 : index
    %87 = vector.load %arg17[%c0_60, %c0_61] : memref<1x64xf32, #tpu.memory_space<vmem>>, vector<1x64xf32>
    %88 = vector.broadcast %87 : vector<1x64xf32> to vector<8x64xf32>
    %89 = arith.addf %86, %88 : vector<8x64xf32>
    %cst_62 = arith.constant 0.00999999977 : f32
    %90 = vector.broadcast %cst_62 : f32 to vector<8x64xf32>
    %91 = arith.mulf %90, %89 : vector<8x64xf32>
    %92 = arith.maximumf %89, %91 : vector<8x64xf32>
    %c0_63 = arith.constant 0 : index
    %c0_64 = arith.constant 0 : index
    %93 = vector.load %arg18[%c0_63, %c0_64] : memref<64x128xf32, #tpu.memory_space<vmem>>, vector<64x128xf32>
    %cst_65 = arith.constant dense<0.000000e+00> : vector<8x128xf32>
    %94 = tpu.matmul %92, %93, %cst_65 {dimension_numbers = #tpu.dot_dimension_numbers<[1], [0], [0], [1], [0, 0, 1, 1], [], []>} : vector<8x64xf32>, vector<64x128xf32>, vector<8x128xf32> -> vector<8x128xf32>
    %c0_66 = arith.constant 0 : index
    %c0_67 = arith.constant 0 : index
    %95 = vector.load %arg19[%c0_66, %c0_67] : memref<1x128xf32, #tpu.memory_space<vmem>>, vector<1x128xf32>
    %96 = vector.broadcast %95 : vector<1x128xf32> to vector<8x128xf32>
    %97 = arith.addf %94, %96 : vector<8x128xf32>
    %cst_68 = arith.constant 0.00999999977 : f32
    %98 = vector.broadcast %cst_68 : f32 to vector<8x128xf32>
    %99 = arith.mulf %98, %97 : vector<8x128xf32>
    %100 = arith.maximumf %97, %99 : vector<8x128xf32>
    %c0_69 = arith.constant 0 : index
    %c0_70 = arith.constant 0 : index
    %101 = vector.load %arg20[%c0_69, %c0_70] : memref<128x64xf32, #tpu.memory_space<vmem>>, vector<128x64xf32>
    %cst_71 = arith.constant dense<0.000000e+00> : vector<8x64xf32>
    %102 = tpu.matmul %100, %101, %cst_71 {dimension_numbers = #tpu.dot_dimension_numbers<[1], [0], [0], [1], [0, 0, 1, 1], [], []>} : vector<8x128xf32>, vector<128x64xf32>, vector<8x64xf32> -> vector<8x64xf32>
    %c0_72 = arith.constant 0 : index
    %c0_73 = arith.constant 0 : index
    %103 = vector.load %arg21[%c0_72, %c0_73] : memref<1x64xf32, #tpu.memory_space<vmem>>, vector<1x64xf32>
    %104 = vector.broadcast %103 : vector<1x64xf32> to vector<8x64xf32>
    %105 = arith.addf %102, %104 : vector<8x64xf32>
    %cst_74 = arith.constant 0.00999999977 : f32
    %106 = vector.broadcast %cst_74 : f32 to vector<8x64xf32>
    %107 = arith.mulf %106, %105 : vector<8x64xf32>
    %108 = arith.maximumf %105, %107 : vector<8x64xf32>
    %c0_75 = arith.constant 0 : index
    %c0_76 = arith.constant 0 : index
    %109 = vector.load %arg22[%c0_75, %c0_76] : memref<64x5xf32, #tpu.memory_space<vmem>>, vector<64x5xf32>
    %cst_77 = arith.constant dense<0.000000e+00> : vector<8x5xf32>
    %110 = tpu.matmul %108, %109, %cst_77 {dimension_numbers = #tpu.dot_dimension_numbers<[1], [0], [0], [1], [0, 0, 1, 1], [], []>} : vector<8x64xf32>, vector<64x5xf32>, vector<8x5xf32> -> vector<8x5xf32>
    %c0_78 = arith.constant 0 : index
    %c0_79 = arith.constant 0 : index
    %111 = vector.load %arg23[%c0_78, %c0_79] : memref<1x5xf32, #tpu.memory_space<vmem>>, vector<1x5xf32>
    %112 = vector.broadcast %111 : vector<1x5xf32> to vector<8x5xf32>
    %113 = arith.addf %110, %112 : vector<8x5xf32>
    %cst_80 = arith.constant 0.000000e+00 : f32
    %114 = vector.broadcast %cst_80 : f32 to vector<8x5xf32>
    %115 = arith.subf %114, %113 : vector<8x5xf32>
    %116 = math.exp %115 : vector<8x5xf32>
    %cst_81 = arith.constant 5.000000e-01 : f32
    %117 = vector.broadcast %cst_81 : f32 to vector<8x5xf32>
    %118 = arith.addf %117, %116 : vector<8x5xf32>
    %cst_82 = arith.constant 1.000000e+00 : f32
    %119 = vector.broadcast %cst_82 : f32 to vector<8x5xf32>
    %120 = arith.divf %119, %118 : vector<8x5xf32>
    %c0_83 = arith.constant 0 : index
    %c0_84 = arith.constant 0 : index
    %121 = vector.load %arg24[%c0_83, %c0_84] : memref<8x5xf32, #tpu.memory_space<vmem>>, vector<8x5xf32>
    tpu.vector_store %arg24[%c0_83, %c0_84], %120 {strides = array<i32>} : memref<8x5xf32, #tpu.memory_space<vmem>>, vector<8x5xf32>,
    return
  }
  func.func @transform_0(%arg0: i32) -> (i32, i32) {
    %c0_i32 = arith.constant 0 : i32
    %c0_i32_0 = arith.constant 0 : i32
    return %arg0, %c0_i32 : i32, i32
  }
  func.func @transform_1(%arg0: i32) -> (i32, i32) {
    %c0_i32 = arith.constant 0 : i32
    %c0_i32_0 = arith.constant 0 : i32
    %c0_i32_1 = arith.constant 0 : i32
    return %c0_i32, %c0_i32_0 : i32, i32
  }
  func.func @transform_2(%arg0: i32) -> (i32, i32) {
    %c0_i32 = arith.constant 0 : i32
    %c0_i32_0 = arith.constant 0 : i32
    %c0_i32_1 = arith.constant 0 : i32
    return %c0_i32, %c0_i32_0 : i32, i32
  }
  func.func @transform_3(%arg0: i32) -> (i32, i32) {
    %c0_i32 = arith.constant 0 : i32
    %c0_i32_0 = arith.constant 0 : i32
    %c0_i32_1 = arith.constant 0 : i32
    return %c0_i32, %c0_i32_0 : i32, i32
  }
  func.func @transform_4(%arg0: i32) -> (i32, i32) {
    %c0_i32 = arith.constant 0 : i32
    %c0_i32_0 = arith.constant 0 : i32
    %c0_i32_1 = arith.constant 0 : i32
    return %c0_i32, %c0_i32_0 : i32, i32
  }
  func.func @transform_5(%arg0: i32) -> (i32, i32) {
    %c0_i32 = arith.constant 0 : i32
    %c0_i32_0 = arith.constant 0 : i32
    %c0_i32_1 = arith.constant 0 : i32
    return %c0_i32, %c0_i32_0 : i32, i32
  }
  func.func @transform_6(%arg0: i32) -> (i32, i32) {
    %c0_i32 = arith.constant 0 : i32
    %c0_i32_0 = arith.constant 0 : i32
    %c0_i32_1 = arith.constant 0 : i32
    return %c0_i32, %c0_i32_0 : i32, i32
  }
  func.func @transform_7(%arg0: i32) -> (i32, i32) {
    %c0_i32 = arith.constant 0 : i32
    %c0_i32_0 = arith.constant 0 : i32
    %c0_i32_1 = arith.constant 0 : i32
    return %c0_i32, %c0_i32_0 : i32, i32
  }
  func.func @transform_8(%arg0: i32) -> (i32, i32) {
    %c0_i32 = arith.constant 0 : i32
    %c0_i32_0 = arith.constant 0 : i32
    %c0_i32_1 = arith.constant 0 : i32
    return %c0_i32, %c0_i32_0 : i32, i32
  }
  func.func @transform_9(%arg0: i32) -> (i32, i32) {
    %c0_i32 = arith.constant 0 : i32
    %c0_i32_0 = arith.constant 0 : i32
    %c0_i32_1 = arith.constant 0 : i32
    return %c0_i32, %c0_i32_0 : i32, i32
  }
  func.func @transform_10(%arg0: i32) -> (i32, i32) {
    %c0_i32 = arith.constant 0 : i32
    %c0_i32_0 = arith.constant 0 : i32
    %c0_i32_1 = arith.constant 0 : i32
    return %c0_i32, %c0_i32_0 : i32, i32
  }
  func.func @transform_11(%arg0: i32) -> (i32, i32) {
    %c0_i32 = arith.constant 0 : i32
    %c0_i32_0 = arith.constant 0 : i32
    %c0_i32_1 = arith.constant 0 : i32
    return %c0_i32, %c0_i32_0 : i32, i32
  }
  func.func @transform_12(%arg0: i32) -> (i32, i32) {
    %c0_i32 = arith.constant 0 : i32
    %c0_i32_0 = arith.constant 0 : i32
    %c0_i32_1 = arith.constant 0 : i32
    return %c0_i32, %c0_i32_0 : i32, i32
  }
  func.func @transform_13(%arg0: i32) -> (i32, i32) {
    %c0_i32 = arith.constant 0 : i32
    %c0_i32_0 = arith.constant 0 : i32
    %c0_i32_1 = arith.constant 0 : i32
    return %c0_i32, %c0_i32_0 : i32, i32
  }
  func.func @transform_14(%arg0: i32) -> (i32, i32) {
    %c0_i32 = arith.constant 0 : i32
    %c0_i32_0 = arith.constant 0 : i32
    %c0_i32_1 = arith.constant 0 : i32
    return %c0_i32, %c0_i32_0 : i32, i32
  }
  func.func @transform_15(%arg0: i32) -> (i32, i32) {
    %c0_i32 = arith.constant 0 : i32
    %c0_i32_0 = arith.constant 0 : i32
    %c0_i32_1 = arith.constant 0 : i32
    return %c0_i32, %c0_i32_0 : i32, i32
  }
  func.func @transform_16(%arg0: i32) -> (i32, i32) {
    %c0_i32 = arith.constant 0 : i32
    %c0_i32_0 = arith.constant 0 : i32
    %c0_i32_1 = arith.constant 0 : i32
    return %c0_i32, %c0_i32_0 : i32, i32
  }
  func.func @transform_17(%arg0: i32) -> (i32, i32) {
    %c0_i32 = arith.constant 0 : i32
    %c0_i32_0 = arith.constant 0 : i32
    %c0_i32_1 = arith.constant 0 : i32
    return %c0_i32, %c0_i32_0 : i32, i32
  }
  func.func @transform_18(%arg0: i32) -> (i32, i32) {
    %c0_i32 = arith.constant 0 : i32
    %c0_i32_0 = arith.constant 0 : i32
    %c0_i32_1 = arith.constant 0 : i32
    return %c0_i32, %c0_i32_0 : i32, i32
  }
  func.func @transform_19(%arg0: i32) -> (i32, i32) {
    %c0_i32 = arith.constant 0 : i32
    %c0_i32_0 = arith.constant 0 : i32
    %c0_i32_1 = arith.constant 0 : i32
    return %c0_i32, %c0_i32_0 : i32, i32
  }
  func.func @transform_20(%arg0: i32) -> (i32, i32) {
    %c0_i32 = arith.constant 0 : i32
    %c0_i32_0 = arith.constant 0 : i32
    %c0_i32_1 = arith.constant 0 : i32
    return %c0_i32, %c0_i32_0 : i32, i32
  }
  func.func @transform_21(%arg0: i32) -> (i32, i32) {
    %c0_i32 = arith.constant 0 : i32
    %c0_i32_0 = arith.constant 0 : i32
    %c0_i32_1 = arith.constant 0 : i32
    return %c0_i32, %c0_i32_0 : i32, i32
  }
  func.func @transform_22(%arg0: i32) -> (i32, i32) {
    %c0_i32 = arith.constant 0 : i32
    %c0_i32_0 = arith.constant 0 : i32
    %c0_i32_1 = arith.constant 0 : i32
    return %c0_i32, %c0_i32_0 : i32, i32
  }
  func.func @transform_23(%arg0: i32) -> (i32, i32) {
    %c0_i32 = arith.constant 0 : i32
    %c0_i32_0 = arith.constant 0 : i32
    return %arg0, %c0_i32 : i32, i32
  }
}

</mosaic_0001>

<bundles_post_ra>
// kernel: tpu_custom_call.1
= control target key start
LH: loop header
LB: loop body
LE: loop exit
PB: predicated region body
PF: predicated region fallthrough
CT: control target
= control target key end

     0   :  { %s3928_s0 = inlined_call_operand.hbm [shape: f32[8,40], index: 0, kind: input, shape index: {}]   ;;  %s3929_s1 = inlined_call_operand.hbm [shape: f32[40,80], index: 1, kind: input, shape index: {}]   ;;  %s3930_s2 = inlined_call_operand.hbm [shape: f32[1,80], index: 2, kind: input, shape index: {}]   ;;  %s3931_s3 = inlined_call_operand.vmem [shape: f32[80,320], index: 3, kind: input, shape index: {}]   ;;  %s3932_s4 = inlined_call_operand.hbm [shape: f32[1,320], index: 4, kind: input, shape index: {}]   ;;  %s3933_s5 = inlined_call_operand.vmem [shape: f32[128,256], index: 5, kind: input, shape index: {}]   ;;  %s3934_s6 = inlined_call_operand.hbm [shape: f32[1,256], index: 6, kind: input, shape index: {}]   ;;  %s3935_s7 = inlined_call_operand.hbm [shape: f32[64,128], index: 7, kind: input, shape index: {}]   ;;  %s3936_s8 = inlined_call_operand.hbm [shape: f32[1,128], index: 8, kind: input, shape index: {}]   ;;  %s3937_s9 = inlined_call_operand.vmem [shape: f32[256,128], index: 9, kind: input, shape index: {}]   ;;  %s3938_s10 = inlined_call_operand.hbm [shape: f32[1,128], index: 10, kind: input, shape index: {}]   ;;  %s3939_s11 = inlined_call_operand.vmem [shape: f32[128,64], index: 11, kind: input, shape index: {}]   ;;  %s3940_s12 = inlined_call_operand.hbm [shape: f32[1,64], index: 12, kind: input, shape index: {}]   ;;  %s3941_s13 = inlined_call_operand.vmem [shape: f32[320,16], index: 13, kind: input, shape index: {}]   ;;  %s3942_s14 = inlined_call_operand.hbm [shape: f32[1,16], index: 14, kind: input, shape index: {}]   ;;  %s3943_s15 = inlined_call_operand.hbm [shape: f32[16,64], index: 15, kind: input, shape index: {}]   ;;  %s3944_s16 = inlined_call_operand.hbm [shape: f32[1,64], index: 16, kind: input, shape index: {}]   ;;  %s3945_s17 = inlined_call_operand.hbm [shape: f32[64,128], index: 17, kind: input, shape index: {}]   ;;  %s3946_s18 = inlined_call_operand.vmem [shape: f32[1,128], index: 18, kind: input, shape index: {}]   ;;  %s3947_s19 = inlined_call_operand.vmem [shape: f32[128,64], index: 19, kind: input, shape index: {}]   ;;  %s3948_s20 = inlined_call_operand.vmem [shape: f32[1,64], index: 20, kind: input, shape index: {}]   ;;  %s3949_s21 = inlined_call_operand.vmem [shape: f32[64,5], index: 21, kind: input, shape index: {}]   ;;  %s3950_s22 = inlined_call_operand.vmem [shape: f32[1,5], index: 22, kind: input, shape index: {}]   ;;  %s3951_s23 = inlined_call_operand.hbm [shape: f32[8,5], index: 23, kind: output, shape index: {}]  }
   0x1   :  { %3961 = sst [smem:[#allocation32_spill]] %s3928_s0 }
   0x2   :  { %3962 = sst [smem:[#allocation33_spill]] %s3929_s1 }
   0x3   :  { %3963 = sst [smem:[#allocation34_spill]] %s3930_s2 }
   0x4   :  { %3964 = sst [smem:[#allocation35_spill]] %s3931_s3 }
   0x5   :  { %3965 = sst [smem:[#allocation36_spill]] %s3932_s4 }
   0x6   :  { %3966 = sst [smem:[#allocation37_spill]] %s3933_s5 }
   0x7   :  { %3967 = sst [smem:[#allocation38_spill]] %s3934_s6 }
   0x8   :  { %3968 = sst [smem:[#allocation39_spill]] %s3935_s7 }
   0x9   :  { %3969 = sst [smem:[#allocation40_spill]] %s3948_s20 }
   0xa   :  { %3970 = sst [smem:[#allocation41_spill]] %s3950_s22 }
   0xb   :  { %3971 = sst [smem:[#allocation42_spill]] %s3951_s23 }
   0xc   :  { %28 = vsyncpa [#allocation3], 0 }
   0xd   :  { %29 = vsyncpa [#allocation6], 0 }
   0xe   :  { %30 = vsyncpa [#allocation9], 0 }
   0xf   :  { %31 = vsyncpa [#allocation12], 0 }
  0x10   :  { %32 = vsyncpa [#allocation15], 0 }
  0x11   :  { %33 = vsyncpa [#allocation18], 0 }
  0x12   :  { %34 = vsyncpa [#allocation21], 0 }
  0x13   :  { %35 = vsyncpa [#allocation4], 0  ;;  %s2867_s4 = smov [#allocation5]   ;;  %s3972_s5 = sld [smem:[#allocation33_spill]] }
  0x14   :  { %s51_s30 = sshll.u32 %s2867_s4, 4  ;;  %s52_s30 = int_to_ptr.vmem [resolvable:$true] %s51_s30 }
  0x19   :  { %s2543_s1 = scalar_lea.hbm %s3972_s5, 640 }
  0x1a   :  { %p2544_p0 = scmp.ne.s32.totalorder %s3972_s5, %s2543_s1  ;;  %p2547_p1 = scmp.lt.u32.totalorder %s2543_s1, %s3972_s5 }
  0x1c   :  { %p2549_p2 = pnand %p2547_p1, %p2544_p0 }
  0x1e   :  { %2552 = shalt.err (!%p2549_p2)
}
  0x1f   :  { %s2553_s7 = scalar_lea.vmem %s52_s30, 640  ;;  %p2558_p4 = scmp.lt.s32.totalorder %s52_s30, %s52_s30 }
  0x20   :  { %p2554_p3 = scmp.ne.s32.totalorder %s52_s30, %s2553_s7  ;;  %p2559_p5 = scmp.lt.s32.totalorder %s2553_s7, %s2553_s7 }
  0x22   :  { %p2560_p6 = por %p2559_p5, %p2558_p4 }
  0x24   :  { %p2561_p7 = pnand %p2560_p6, %p2554_p3 }
  0x26   :  { %2564 = shalt.err (!%p2561_p7)
}
  0x27   :  { %s2868_s28 = smov 128   ;;  %s2869_s29 = smov 8  }
  0x28   :  { %57 = dma.hbm_to_vmem [thread:$0]  %s3972_s5, 640, %s52_s30, [#allocation6], %s2868_s28, %s2868_s28, %s2869_s29  }
  0x29   :  { %s2870_s4 = smov [#allocation8]   ;;  %s2871_s25 = smov [#allocation11]  }
  0x2a   :  { %s76_s24 = sshll.u32 %s2870_s4, 4  ;;  %s97_s1 = sshll.u32 %s2871_s25, 4  ;;  %s77_s24 = int_to_ptr.vmem [resolvable:$true] %s76_s24  ;;  %s98_s1 = int_to_ptr.vmem [resolvable:$true] %s97_s1 }
  0x2b   :  { %s3973_s6 = sld [smem:[#allocation36_spill]] }
  0x31   :  { %s2565_s27 = scalar_lea.hbm %s3973_s6, 48 }
  0x32   :  { %p2566_p8 = scmp.ne.s32.totalorder %s3973_s6, %s2565_s27  ;;  %p2569_p9 = scmp.lt.u32.totalorder %s2565_s27, %s3973_s6 }
  0x34   :  { %p2571_p10 = pnand %p2569_p9, %p2566_p8 }
  0x36   :  { %2574 = shalt.err (!%p2571_p10)
}
  0x37   :  { %s2575_s30 = scalar_lea.vmem %s77_s24, 48  ;;  %s2579_s5 = scalar_lea.vmem %s77_s24, 64 }
  0x38   :  { %p2576_p11 = scmp.ne.s32.totalorder %s77_s24, %s2575_s30  ;;  %p2580_p12 = scmp.lt.s32.totalorder %s77_s24, %s77_s24 }
  0x39   :  { %p2581_p13 = scmp.lt.s32.totalorder %s2579_s5, %s2575_s30 }
  0x3b   :  { %p2582_p0 = por %p2581_p13, %p2580_p12 }
  0x3d   :  { %p2583_p1 = pnand %p2582_p0, %p2576_p11 }
  0x3f   :  { %2586 = shalt.err (!%p2583_p1)
}
  0x40   :  { %79 = dma.hbm_to_vmem [thread:$0]  %s3973_s6, 48, %s77_s24, [#allocation9]  }
  0x41   :  { %s3974_s25 = sld [smem:[#allocation39_spill]] }
  0x47   :  { %s2587_s20 = scalar_lea.hbm %s3974_s25, 1024 }
  0x48   :  { %p2588_p2 = scmp.ne.s32.totalorder %s3974_s25, %s2587_s20  ;;  %p2591_p3 = scmp.lt.u32.totalorder %s2587_s20, %s3974_s25 }
  0x4a   :  { %p2593_p4 = pnand %p2591_p3, %p2588_p2 }
  0x4c   :  { %2596 = shalt.err (!%p2593_p4)
}
  0x4d   :  { %s2597_s7 = scalar_lea.vmem %s98_s1, 1024  ;;  %p2602_p6 = scmp.lt.s32.totalorder %s98_s1, %s98_s1 }
  0x4e   :  { %p2598_p5 = scmp.ne.s32.totalorder %s98_s1, %s2597_s7  ;;  %p2603_p7 = scmp.lt.s32.totalorder %s2597_s7, %s2597_s7 }
  0x50   :  { %p2604_p8 = por %p2603_p7, %p2602_p6 }
  0x52   :  { %p2605_p9 = pnand %p2604_p8, %p2598_p5 }
  0x54   :  { %2608 = shalt.err (!%p2605_p9)
}
  0x55   :  { %103 = dma.hbm_to_vmem [thread:$0]  %s3974_s25, 1024, %s98_s1, [#allocation12], %s2868_s28, %s2868_s28, %s2869_s29  }
  0x56   :  { %s2872_s30 = smov [#allocation14]   ;;  %s2873_s3 = smov [#allocation17]  }
  0x57   :  { %s122_s5 = sshll.u32 %s2872_s30, 4  ;;  %s146_s0 = sshll.u32 %s2873_s3, 4  ;;  %s123_s5 = int_to_ptr.vmem [resolvable:$true] %s122_s5  ;;  %s147_s0 = int_to_ptr.vmem [resolvable:$true] %s146_s0 }
  0x58   :  { %s2609_s20 = scalar_lea.hbm %s3938_s10, 16 }
  0x59   :  { %p2610_p10 = scmp.ne.s32.totalorder %s3938_s10, %s2609_s20  ;;  %p2613_p11 = scmp.lt.u32.totalorder %s2609_s20, %s3938_s10 }
  0x5b   :  { %p2615_p12 = pnand %p2613_p11, %p2610_p10 }
  0x5d   :  { %2618 = shalt.err (!%p2615_p12)
}
  0x5e   :  { %s2619_s1 = scalar_lea.vmem %s123_s5, 16  ;;  %s2623_s25 = scalar_lea.vmem %s123_s5, 32 }
  0x5f   :  { %p2620_p13 = scmp.ne.s32.totalorder %s123_s5, %s2619_s1  ;;  %p2624_p0 = scmp.lt.s32.totalorder %s123_s5, %s123_s5 }
  0x60   :  { %p2625_p1 = scmp.lt.s32.totalorder %s2623_s25, %s2619_s1 }
  0x62   :  { %p2626_p2 = por %p2625_p1, %p2624_p0 }
  0x64   :  { %p2627_p3 = pnand %p2626_p2, %p2620_p13 }
  0x66   :  { %2630 = shalt.err (!%p2627_p3)
}
  0x67   :  { %125 = dma.hbm_to_vmem [thread:$0]  %s3938_s10, 16, %s123_s5, [#allocation15]  }
  0x68   :  { %s2631_s3 = scalar_lea.hbm %s3942_s14, 16 }
  0x69   :  { %p2632_p4 = scmp.ne.s32.totalorder %s3942_s14, %s2631_s3  ;;  %p2635_p5 = scmp.lt.u32.totalorder %s2631_s3, %s3942_s14 }
  0x6b   :  { %p2637_p6 = pnand %p2635_p5, %p2632_p4 }
  0x6d   :  { %2640 = shalt.err (!%p2637_p6)
}
  0x6e   :  { %s2641_s26 = scalar_lea.vmem %s147_s0, 16  ;;  %s2645_s2 = scalar_lea.vmem %s147_s0, 32 }
  0x6f   :  { %p2642_p7 = scmp.ne.s32.totalorder %s147_s0, %s2641_s26  ;;  %p2646_p8 = scmp.lt.s32.totalorder %s147_s0, %s147_s0 }
  0x70   :  { %p2647_p9 = scmp.lt.s32.totalorder %s2645_s2, %s2641_s26 }
  0x72   :  { %p2648_p10 = por %p2647_p9, %p2646_p8 }
  0x74   :  { %p2649_p11 = pnand %p2648_p10, %p2642_p7 }
  0x76   :  { %2652 = shalt.err (!%p2649_p11)
}
  0x77   :  { %149 = dma.hbm_to_vmem [thread:$0]  %s3942_s14, 16, %s147_s0, [#allocation18]  }
  0x78   :  { %s2874_s27 = smov [#allocation20]   ;;  %s2875_s25 = smov [#allocation2]  }
  0x79   :  { %s168_s1 = sshll.u32 %s2874_s27, 4  ;;  %s42_s7 = sshll.u32 %s2875_s25, 4  ;;  %s169_s1 = int_to_ptr.vmem [resolvable:$true] %s168_s1  ;;  %s43_s7 = int_to_ptr.vmem [resolvable:$true] %s42_s7 }
  0x7a   :  { %s2653_s30 = scalar_lea.hbm %s3944_s16, 16 }
  0x7b   :  { %p2654_p12 = scmp.ne.s32.totalorder %s3944_s16, %s2653_s30  ;;  %p2657_p13 = scmp.lt.u32.totalorder %s2653_s30, %s3944_s16 }
  0x7d   :  { %p2659_p0 = pnand %p2657_p13, %p2654_p12 }
  0x7f   :  { %2662 = shalt.err (!%p2659_p0)
}
  0x80   :  { %s2663_s14 = scalar_lea.vmem %s169_s1, 16  ;;  %s2667_s0 = scalar_lea.vmem %s169_s1, 32 }
  0x81   :  { %p2664_p1 = scmp.ne.s32.totalorder %s169_s1, %s2663_s14  ;;  %p2668_p2 = scmp.lt.s32.totalorder %s169_s1, %s169_s1 }
  0x82   :  { %p2669_p3 = scmp.lt.s32.totalorder %s2667_s0, %s2663_s14 }
  0x84   :  { %p2670_p4 = por %p2669_p3, %p2668_p2 }
  0x86   :  { %p2671_p5 = pnand %p2670_p4, %p2664_p1 }
  0x88   :  { %2674 = shalt.err (!%p2671_p5)
}
  0x89   :  { %171 = dma.hbm_to_vmem [thread:$0]  %s3944_s16, 16, %s169_s1, [#allocation21]  }
  0x8a   :  { %s3975_s5 = sld [smem:[#allocation32_spill]] }
  0x90   :  { %s2675_s27 = scalar_lea.hbm %s3975_s5, 128 }
  0x91   :  { %p2676_p6 = scmp.ne.s32.totalorder %s3975_s5, %s2675_s27  ;;  %p2679_p7 = scmp.lt.u32.totalorder %s2675_s27, %s3975_s5 }
  0x93   :  { %p2681_p8 = pnand %p2679_p7, %p2676_p6 }
  0x95   :  { %2684 = shalt.err (!%p2681_p8)
}
  0x96   :  { %s2685_s3 = scalar_lea.vmem %s43_s7, 128  ;;  %p2690_p10 = scmp.lt.s32.totalorder %s43_s7, %s43_s7 }
  0x97   :  { %p2686_p9 = scmp.ne.s32.totalorder %s43_s7, %s2685_s3  ;;  %p2691_p11 = scmp.lt.s32.totalorder %s2685_s3, %s2685_s3 }
  0x99   :  { %p2692_p12 = por %p2691_p11, %p2690_p10 }
  0x9b   :  { %p2693_p13 = pnand %p2692_p12, %p2686_p9 }
  0x9d   :  { %2696 = shalt.err (!%p2693_p13)
}
  0x9e   :  { %45 = dma.hbm_to_vmem [thread:$0]  %s3975_s5, 128, %s43_s7, [#allocation3]  }
  0x9f   :  { %s2876_s23 = smov [#allocation7]   ;;  %s2877_s20 = smov [#allocation10]  }
  0xa0   :  { %s64_s4 = sshll.u32 %s2876_s23, 4  ;;  %s88_s14 = sshll.u32 %s2877_s20, 4  ;;  %s65_s4 = int_to_ptr.vmem [resolvable:$true] %s64_s4  ;;  %s89_s14 = int_to_ptr.vmem [resolvable:$true] %s88_s14 }
  0xa1   :  { %s3976_s26 = sld [smem:[#allocation34_spill]] }
  0xa7   :  { %s2697_s2 = scalar_lea.hbm %s3976_s26, 16 }
  0xa8   :  { %p2698_p0 = scmp.ne.s32.totalorder %s3976_s26, %s2697_s2  ;;  %p2701_p1 = scmp.lt.u32.totalorder %s2697_s2, %s3976_s26 }
  0xaa   :  { %p2703_p2 = pnand %p2701_p1, %p2698_p0 }
  0xac   :  { %2706 = shalt.err (!%p2703_p2)
}
  0xad   :  { %s2707_s7 = scalar_lea.vmem %s65_s4, 16  ;;  %s2711_s5 = scalar_lea.vmem %s65_s4, 32 }
  0xae   :  { %p2708_p3 = scmp.ne.s32.totalorder %s65_s4, %s2707_s7  ;;  %p2712_p4 = scmp.lt.s32.totalorder %s65_s4, %s65_s4 }
  0xaf   :  { %p2713_p5 = scmp.lt.s32.totalorder %s2711_s5, %s2707_s7 }
  0xb1   :  { %p2714_p6 = por %p2713_p5, %p2712_p4 }
  0xb3   :  { %p2715_p7 = pnand %p2714_p6, %p2708_p3 }
  0xb5   :  { %2718 = shalt.err (!%p2715_p7)
}
  0xb6   :  { %67 = dma.hbm_to_vmem [thread:$0]  %s3976_s26, 16, %s65_s4, [#allocation6]  }
  0xb7   :  { %s3977_s1 = sld [smem:[#allocation38_spill]] }
  0xbd   :  { %s2719_s23 = scalar_lea.hbm %s3977_s1, 32 }
  0xbe   :  { %p2720_p8 = scmp.ne.s32.totalorder %s3977_s1, %s2719_s23  ;;  %p2723_p9 = scmp.lt.u32.totalorder %s2719_s23, %s3977_s1 }
  0xc0   :  { %p2725_p10 = pnand %p2723_p9, %p2720_p8 }
  0xc2   :  { %2728 = shalt.err (!%p2725_p10)
}
  0xc3   :  { %s2729_s10 = scalar_lea.vmem %s89_s14, 32  ;;  %p2734_p12 = scmp.lt.s32.totalorder %s89_s14, %s89_s14 }
  0xc4   :  { %p2730_p11 = scmp.ne.s32.totalorder %s89_s14, %s2729_s10  ;;  %p2735_p13 = scmp.lt.s32.totalorder %s2729_s10, %s2729_s10 }
  0xc6   :  { %p2736_p0 = por %p2735_p13, %p2734_p12 }
  0xc8   :  { %p2737_p1 = pnand %p2736_p0, %p2730_p11 }
  0xca   :  { %2740 = shalt.err (!%p2737_p1)
}
  0xcb   :  { %91 = dma.hbm_to_vmem [thread:$0]  %s3977_s1, 32, %s89_s14, [#allocation9]  }
  0xcc   :  { %s2878_s27 = smov [#allocation13]   ;;  %s2879_s24 = smov [#allocation16]  }
  0xcd   :  { %s110_s25 = sshll.u32 %s2878_s27, 4  ;;  %s134_s7 = sshll.u32 %s2879_s24, 4  ;;  %s111_s25 = int_to_ptr.vmem [resolvable:$true] %s110_s25  ;;  %s135_s7 = int_to_ptr.vmem [resolvable:$true] %s134_s7 }
  0xce   :  { %s2741_s30 = scalar_lea.hbm %s3936_s8, 16 }
  0xcf   :  { %p2742_p2 = scmp.ne.s32.totalorder %s3936_s8, %s2741_s30  ;;  %p2745_p3 = scmp.lt.u32.totalorder %s2741_s30, %s3936_s8 }
  0xd1   :  { %p2747_p4 = pnand %p2745_p3, %p2742_p2 }
  0xd3   :  { %2750 = shalt.err (!%p2747_p4)
}
  0xd4   :  { %s2751_s14 = scalar_lea.vmem %s111_s25, 16  ;;  %s2755_s1 = scalar_lea.vmem %s111_s25, 32 }
  0xd5   :  { %p2752_p5 = scmp.ne.s32.totalorder %s111_s25, %s2751_s14  ;;  %p2756_p6 = scmp.lt.s32.totalorder %s111_s25, %s111_s25 }
  0xd6   :  { %p2757_p7 = scmp.lt.s32.totalorder %s2755_s1, %s2751_s14 }
  0xd8   :  { %p2758_p8 = por %p2757_p7, %p2756_p6 }
  0xda   :  { %p2759_p9 = pnand %p2758_p8, %p2752_p5 }
  0xdc   :  { %2762 = shalt.err (!%p2759_p9)
}
  0xdd   :  { %113 = dma.hbm_to_vmem [thread:$0]  %s3936_s8, 16, %s111_s25, [#allocation12]  }
  0xde   :  { %s2763_s4 = scalar_lea.hbm %s3940_s12, 16 }
  0xdf   :  { %p2764_p10 = scmp.ne.s32.totalorder %s3940_s12, %s2763_s4  ;;  %p2767_p11 = scmp.lt.u32.totalorder %s2763_s4, %s3940_s12 }
  0xe1   :  { %p2769_p12 = pnand %p2767_p11, %p2764_p10 }
  0xe3   :  { %2772 = shalt.err (!%p2769_p12)
}
  0xe4   :  { %s2773_s6 = scalar_lea.vmem %s135_s7, 16  ;;  %s2777_s30 = scalar_lea.vmem %s135_s7, 32 }
  0xe5   :  { %p2774_p13 = scmp.ne.s32.totalorder %s135_s7, %s2773_s6  ;;  %p2778_p0 = scmp.lt.s32.totalorder %s135_s7, %s135_s7 }
  0xe6   :  { %p2779_p1 = scmp.lt.s32.totalorder %s2777_s30, %s2773_s6 }
  0xe8   :  { %p2780_p2 = por %p2779_p1, %p2778_p0 }
  0xea   :  { %p2781_p3 = pnand %p2780_p2, %p2774_p13 }
  0xec   :  { %2784 = shalt.err (!%p2781_p3)
}
  0xed   :  { %137 = dma.hbm_to_vmem [thread:$0]  %s3940_s12, 16, %s135_s7, [#allocation15]  }
  0xee   :  { %s2880_s3 = smov [#allocation19]   ;;  %s2881_s23 = smov [#allocation22]  }
  0xef   :  { %s155_s16 = sshll.u32 %s2880_s3, 4  ;;  %s177_s20 = sshll.u32 %s2881_s23, 4  ;;  %s156_s16 = int_to_ptr.vmem [resolvable:$true] %s155_s16  ;;  %s178_s20 = int_to_ptr.vmem [resolvable:$true] %s177_s20 }
  0xf0   :  { %s2785_s0 = scalar_lea.hbm %s3943_s15, 256 }
  0xf1   :  { %p2786_p4 = scmp.ne.s32.totalorder %s3943_s15, %s2785_s0  ;;  %p2789_p5 = scmp.lt.u32.totalorder %s2785_s0, %s3943_s15 }
  0xf3   :  { %p2791_p6 = pnand %p2789_p5, %p2786_p4 }
  0xf5   :  { %2794 = shalt.err (!%p2791_p6)
}
  0xf6   :  { %s2795_s12 = scalar_lea.vmem %s156_s16, 256  ;;  %p2800_p8 = scmp.lt.s32.totalorder %s156_s16, %s156_s16 }
  0xf7   :  { %p2796_p7 = scmp.ne.s32.totalorder %s156_s16, %s2795_s12  ;;  %p2801_p9 = scmp.lt.s32.totalorder %s2795_s12, %s2795_s12 }
  0xf9   :  { %p2802_p10 = por %p2801_p9, %p2800_p8 }
  0xfb   :  { %p2803_p11 = pnand %p2802_p10, %p2796_p7 }
  0xfd   :  { %2806 = shalt.err (!%p2803_p11)
}
  0xfe   :  { %161 = dma.hbm_to_vmem [thread:$0]  %s3943_s15, 256, %s156_s16, [#allocation18], %s2868_s28, %s2868_s28, %s2869_s29  }
  0xff   :  { %s2807_s5 = scalar_lea.hbm %s3945_s17, 1024 }
 0x100   :  { %p2808_p12 = scmp.ne.s32.totalorder %s3945_s17, %s2807_s5  ;;  %p2811_p13 = scmp.lt.u32.totalorder %s2807_s5, %s3945_s17 }
 0x102   :  { %p2813_p0 = pnand %p2811_p13, %p2808_p12 }
 0x104   :  { %2816 = shalt.err (!%p2813_p0)
}
 0x105   :  { %s2817_s3 = scalar_lea.vmem %s178_s20, 1024  ;;  %p2822_p2 = scmp.lt.s32.totalorder %s178_s20, %s178_s20 }
 0x106   :  { %p2818_p1 = scmp.ne.s32.totalorder %s178_s20, %s2817_s3  ;;  %p2823_p3 = scmp.lt.s32.totalorder %s2817_s3, %s2817_s3 }
 0x108   :  { %p2824_p4 = por %p2823_p3, %p2822_p2 }
 0x10a   :  { %p2825_p5 = pnand %p2824_p4, %p2818_p1 }
 0x10c   :  { %2828 = shalt.err (!%p2825_p5)
}
 0x10d   :  { %183 = dma.hbm_to_vmem [thread:$0]  %s3945_s17, 1024, %s178_s20, [#allocation21], %s2868_s28, %s2868_s28, %s2869_s29  }
 0x10e   :  { %2851 = dma.done.wait [#allocation3], 128  }
 0x10f   :  { %2852 = vsyncadd [#allocation3], 4294967168 }
 0x110   :  { %2853 = dma.done.wait [#allocation6], 656  }
 0x111   :  { %2854 = vsyncadd [#allocation6], 4294966640 }
 0x112   :  { %2855 = dma.done.wait [#allocation9], 80  }
 0x113   :  { %2856 = vsyncadd [#allocation9], 4294967216 }
 0x114   :  { %2857 = dma.done.wait [#allocation12], 1040  }
 0x115   :  { %2858 = vsyncadd [#allocation12], 4294966256 }
 0x116   :  { %2859 = dma.done.wait [#allocation15], 32  }
 0x117   :  { %2860 = vsyncadd [#allocation15], 4294967264 }
 0x118   :  { %2861 = dma.done.wait [#allocation18], 272  }
 0x119   :  { %2862 = vsyncadd [#allocation18], 4294967024 }
 0x11a   :  { %2863 = dma.done.wait [#allocation21], 1040  }
 0x11b   :  { %2864 = vsyncadd [#allocation21], 4294966256  ;;  %v2882_v0 = vmov 0.0|0.0   ;;  %vm2883_vm0 = vmmov 0   ;;  %v2884_v1 = vmov 0.0   ;;  %v234_v2 = vld [vmem:[#allocation5] sm:$0xff] }
 0x11c   :  { %2204 = vmatprep.subr.bf16.mxu0 %v2882_v0  ;;  %1955 = vmatprep.mubr.msk.f32.mxu0 %vm2883_vm0, %v2884_v1  ;;  %v235_v3 = vld [vmem:[#allocation5 + $0x8] sm:$0xff]  ;;  %v236_v4 = vld [vmem:[#allocation5 + $0x10] sm:$0xff]  ;;  %v237_v6 = vld [vmem:[#allocation5 + $0x18] sm:$0xff]  ;;  %s3978_s29 = sld [smem:[#allocation35_spill]]  ;;  %vm246_vm1 = vcmask 326656   ;;  %s3979_s27 = sld [smem:[#allocation37_spill]] }
 0x11d   :  { %437 = vmatprep.mubr.f32.mxu1 %v2884_v1  ;;  %v2205_v5 = vpack.c.bf16 %v235_v3, %v234_v2  ;;  %v2208_v10 = vpack.c.bf16 %v237_v6, %v236_v4  ;;  %v238_v27 = vld [vmem:[#allocation5 + $0x20] sm:$0xff]  ;;  %v233_v30 = vld [vmem:[#allocation2] sm:$0xff]  ;;  %v1734_v58 = vld [vmem:[#allocation7] ss:$0 sm:$0xff]  ;;  %vm369_vm2 = vcmask 654336   ;;  %vm1092_vm3 = vcmask 523264  }
 0x11e   :  { %vm1356_vm4 = vcmask 130048   ;;  %s3980_s6 = sld [smem:[#allocation40_spill]]  ;;  %s3981_s25 = sld [smem:[#allocation41_spill]]  ;;  %vm1711_vm5 = vcmask 39936  }
 0x11f   :  { %2206 = vmatpush3.bf16.msra.mxu0 %v2205_v5 }
 0x120   :  { %2207 = vmatprep.subr.bf16.mxu0 %v2882_v0 }
 0x122   :  { %v323_v7 = vld [vmem:[%s3978_s29 + $0x8] sm:$0xff]  ;;  %v326_v8 = vld [vmem:[%s3978_s29 + $0x20] sm:$0xff]  ;;  %v325_v12 = vld [vmem:[%s3978_s29 + $0x18] sm:$0xff] }
 0x123   :  { %v322_v9 = vld [vmem:[%s3978_s29] sm:$0xff]  ;;  %v2210_v11 = vpack.c.bf16 %v326_v8, %v323_v7  ;;  %v329_v14 = vld [vmem:[%s3978_s29 + $0x38] sm:$0xff]  ;;  %v332_v15 = vld [vmem:[%s3978_s29 + $0x50] sm:$0xff]  ;;  %2209 = vmatpush3.bf16.msra.mxu0 %v2208_v10 }
 0x124   :  { %v2212_v13 = vpack.c.bf16 %v325_v12, %v322_v9  ;;  %v328_v16 = vld [vmem:[%s3978_s29 + $0x30] sm:$0xff]  ;;  %v2214_v18 = vpack.c.bf16 %v332_v15, %v329_v14  ;;  %v331_v19 = vld [vmem:[%s3978_s29 + $0x48] sm:$0xff]  ;;  %v338_v23 = vld [vmem:[%s3978_s29 + $0x80] sm:$0xff]  ;;  %1953 = vmatprep.subr.mxu0 %v2884_v1 }
 0x125   :  { %2211 = vmatprep.subr.bf16.mxu1 %v2210_v11  ;;  %v324_v17 = vld [vmem:[%s3978_s29 + $0x10] sm:$0xff]  ;;  %v327_v20 = vld [vmem:[%s3978_s29 + $0x28] sm:$0xff]  ;;  %v2216_v21 = vpack.c.bf16 %v331_v19, %v328_v16  ;;  %v334_v25 = vld [vmem:[%s3978_s29 + $0x60] sm:$0xff] }
 0x126   :  { %2213 = vmatpush1.bf16.msra.mxu1 %v2212_v13  ;;  %v335_v22 = vld [vmem:[%s3978_s29 + $0x68] sm:$0xff]  ;;  %v337_v26 = vld [vmem:[%s3978_s29 + $0x78] sm:$0xff]  ;;  %v344_v29 = vld [vmem:[%s3978_s29 + $0xb0] sm:$0xff]  ;;  %v2231_v31 = vpack.c.bf16 %v327_v20, %v324_v17 }
 0x127   :  { %2215 = vmatprep.subr.bf16.mxu1 %v2214_v18  ;;  %v2218_v24 = vpack.c.bf16 %v338_v23, %v335_v22  ;;  %v341_v28 = vld [vmem:[%s3978_s29 + $0x98] sm:$0xff]  ;;  %v330_v32 = vld [vmem:[%s3978_s29 + $0x40] sm:$0xff]  ;;  %v2220_v34 = vpack.c.bf16 %v337_v26, %v334_v25  ;;  %1954 = vmatpush3.msra.mxu0 %v238_v27  ;;  %v336_v37 = vld [vmem:[%s3978_s29 + $0x70] sm:$0xff] }
 0x128   :  { %v333_v33 = vld [vmem:[%s3978_s29 + $0x58] sm:$0xff]  ;;  %v2222_v35 = vpack.c.bf16 %v344_v29, %v341_v28  ;;  %1956 = vmatmul.mubr.msk.f32.vlgmr.msra.gmra.mrb[0].mxu0 %vm246_vm1, %v233_v30  ;;  %2230 = vmatprep.subr.bf16.mxu0 %v2882_v0  ;;  %v339_v38 = vld [vmem:[%s3978_s29 + $0x88] sm:$0xff]  ;;  %v340_v40 = vld [vmem:[%s3978_s29 + $0x90] sm:$0xff] }
 0x129   :  { %2232 = vmatpush3.bf16.msra.mxu0 %v2231_v31  ;;  %v2234_v36 = vpack.c.bf16 %v333_v33, %v330_v32  ;;  %1978 = vmatprep.mubr.msk.f32.mxu0 %vm2883_vm0, %v2884_v1  ;;  %v2237_v39 = vpack.c.bf16 %v339_v38, %v336_v37  ;;  %v343_v41 = vld [vmem:[%s3978_s29 + $0xa8] sm:$0xff]  ;;  %v342_v42 = vld [vmem:[%s3978_s29 + $0xa0] sm:$0xff]  ;;  %v345_v44 = vld [vmem:[%s3978_s29 + $0xb8] sm:$0xff] }
 0x12a   :  { %2217 = vmatpush1.bf16.msra.mxu1 %v2216_v21  ;;  %2233 = vmatprep.subr.bf16.mxu0 %v2882_v0  ;;  %v2224_v43 = vpack.c.bf16 %v343_v41, %v340_v40  ;;  %v2240_v45 = vpack.c.bf16 %v345_v44, %v342_v42  ;;  %v347_v46 = vld [vmem:[%s3978_s29 + $0xc8] sm:$0xff]  ;;  %v350_v47 = vld [vmem:[%s3978_s29 + $0xe0] sm:$0xff]  ;;  %v349_v50 = vld [vmem:[%s3978_s29 + $0xd8] sm:$0xff] }
 0x12b   :  { %2219 = vmatprep.subr.bf16.mxu1 %v2218_v24  ;;  %v2226_v48 = vpack.c.bf16 %v350_v47, %v347_v46  ;;  %v346_v49 = vld [vmem:[%s3978_s29 + $0xc0] sm:$0xff]  ;;  %v348_v51 = vld [vmem:[%s3978_s29 + $0xd0] sm:$0xff]  ;;  %v351_v53 = vld [vmem:[%s3978_s29 + $0xe8] sm:$0xff] }
 0x12c   :  { %v2228_v52 = vpack.c.bf16 %v349_v50, %v346_v49  ;;  %v2243_v54 = vpack.c.bf16 %v351_v53, %v348_v51  ;;  %v561_v55 = vld [vmem:[%s3979_s27 + $0x8] sm:$0xff]  ;;  %v563_v56 = vld [vmem:[%s3979_s27 + $0x18] sm:$0xff]  ;;  %v560_v62 = vld [vmem:[%s3979_s27] sm:$0xff] }
 0x12d   :  { %2235 = vmatpush3.bf16.msra.mxu0 %v2234_v36  ;;  %v3283_v57 = vpack.c.bf16 %v563_v56, %v561_v55  ;;  %v562_v63 = vld [vmem:[%s3979_s27 + $0x10] sm:$0xff]  ;;  %v565_v2 = vld [vmem:[%s3979_s27 + $0x28] sm:$0xff]  ;;  %v567_v3 = vld [vmem:[%s3979_s27 + $0x38] sm:$0xff] }
 0x12e   :  { %2221 = vmatpush1.bf16.msra.mxu1 %v2220_v34  ;;  %2236 = vmatprep.subr.bf16.mxu0 %v2882_v0  ;;  %v3298_v5 = vpack.c.bf16 %v562_v63, %v560_v62  ;;  %v3300_v7 = vpack.c.bf16 %v567_v3, %v565_v2  ;;  %v564_v8 = vld [vmem:[%s3979_s27 + $0x20] sm:$0xff]  ;;  %v566_v9 = vld [vmem:[%s3979_s27 + $0x30] sm:$0xff]  ;;  %v569_v10 = vld [vmem:[%s3979_s27 + $0x48] sm:$0xff] }
 0x12f   :  { %2223 = vmatprep.subr.bf16.mxu1 %v2222_v35  ;;  %v571_v11 = vld [vmem:[%s3979_s27 + $0x58] sm:$0xff]  ;;  %v3315_v12 = vpack.c.bf16 %v566_v9, %v564_v8  ;;  %v568_v14 = vld [vmem:[%s3979_s27 + $0x40] sm:$0xff]  ;;  %v570_v15 = vld [vmem:[%s3979_s27 + $0x50] sm:$0xff] }
 0x130   :  { %v3319_v13 = vpack.c.bf16 %v571_v11, %v569_v10  ;;  %v573_v16 = vld [vmem:[%s3979_s27 + $0x68] sm:$0xff]  ;;  %v575_v17 = vld [vmem:[%s3979_s27 + $0x78] sm:$0xff]  ;;  %v3334_v18 = vpack.c.bf16 %v570_v15, %v568_v14  ;;  %v572_v20 = vld [vmem:[%s3979_s27 + $0x60] sm:$0xff] }
 0x131   :  { %2238 = vmatpush3.bf16.msra.mxu0 %v2237_v39  ;;  %v3337_v19 = vpack.c.bf16 %v575_v17, %v573_v16  ;;  %v574_v21 = vld [vmem:[%s3979_s27 + $0x70] sm:$0xff]  ;;  %v577_v22 = vld [vmem:[%s3979_s27 + $0x88] sm:$0xff]  ;;  %v579_v23 = vld [vmem:[%s3979_s27 + $0x98] sm:$0xff] }
 0x132   :  { %2239 = vmatprep.subr.bf16.mxu0 %v2882_v0  ;;  %2225 = vmatpush1.bf16.msra.mxu1 %v2224_v43  ;;  %v3352_v24 = vpack.c.bf16 %v574_v21, %v572_v20  ;;  %v3355_v25 = vpack.c.bf16 %v579_v23, %v577_v22  ;;  %v576_v26 = vld [vmem:[%s3979_s27 + $0x80] sm:$0xff]  ;;  %v578_v27 = vld [vmem:[%s3979_s27 + $0x90] sm:$0xff]  ;;  %v581_v28 = vld [vmem:[%s3979_s27 + $0xa8] sm:$0xff] }
 0x133   :  { %2227 = vmatprep.subr.bf16.mxu1 %v2226_v48  ;;  %v583_v29 = vld [vmem:[%s3979_s27 + $0xb8] sm:$0xff]  ;;  %v3370_v30 = vpack.c.bf16 %v578_v27, %v576_v26  ;;  %v580_v32 = vld [vmem:[%s3979_s27 + $0xa0] sm:$0xff]  ;;  %v582_v33 = vld [vmem:[%s3979_s27 + $0xb0] sm:$0xff] }
 0x134   :  { %v3373_v31 = vpack.c.bf16 %v583_v29, %v581_v28  ;;  %v585_v34 = vld [vmem:[%s3979_s27 + $0xc8] sm:$0xff]  ;;  %v587_v35 = vld [vmem:[%s3979_s27 + $0xd8] sm:$0xff]  ;;  %v3388_v36 = vpack.c.bf16 %v582_v33, %v580_v32  ;;  %v584_v38 = vld [vmem:[%s3979_s27 + $0xc0] sm:$0xff]  ;;  %v354_v29 = vlaneseq }
 0x135   :  { %2241 = vmatpush3.bf16.msra.mxu0 %v2240_v45  ;;  %v3391_v37 = vpack.c.bf16 %v587_v35, %v585_v34  ;;  %v586_v39 = vld [vmem:[%s3979_s27 + $0xd0] sm:$0xff]  ;;  %v589_v41 = vld [vmem:[%s3979_s27 + $0xe8] sm:$0xff]  ;;  %v591_v42 = vld [vmem:[%s3979_s27 + $0xf8] sm:$0xff] }
 0x136   :  { %2242 = vmatprep.subr.bf16.mxu0 %v2882_v0  ;;  %2229 = vmatpush1.bf16.msra.mxu1 %v2228_v52  ;;  %v3400_v40 = vpack.c.bf16 %v586_v39, %v584_v38  ;;  %v3410_v43 = vpack.c.bf16 %v591_v42, %v589_v41  ;;  %v588_v44 = vld [vmem:[%s3979_s27 + $0xe0] sm:$0xff]  ;;  %v590_v45 = vld [vmem:[%s3979_s27 + $0xf0] sm:$0xff]  ;;  %v696_v48 = vld [vmem:[%s3937_s9 + $0x88] sm:$0xff]  ;;  %v3531_v32 = vshrl.u32 %v354_v29, 7 }
 0x137   :  { %2246 = vmatprep.subr.bf16.mxu1 %v3283_v57  ;;  %v3418_v46 = vpack.c.bf16 %v590_v45, %v588_v44  ;;  %v695_v47 = vld [vmem:[%s3937_s9 + $0x80] sm:$0xff]  ;;  %v680_v51 = vld [vmem:[%s3937_s9 + $0x8] sm:$0xff]  ;;  %v697_v52 = vld [vmem:[%s3937_s9 + $0x90] sm:$0xff] }
 0x138   :  { %v679_v49 = vld [vmem:[%s3937_s9] sm:$0xff]  ;;  %v3432_v50 = vpack.c.bf16 %v696_v48, %v695_v47  ;;  %v698_v53 = vld [vmem:[%s3937_s9 + $0x98] sm:$0xff]  ;;  %v681_v56 = vld [vmem:[%s3937_s9 + $0x10] sm:$0xff]  ;;  %v356_v33 = vsub.s32 0, %v3531_v32  ;;  %v360_v48 = vsub.s32 1, %v3531_v32 }
 0x139   :  { %2244 = vmatpush3.bf16.msra.mxu0 %v2243_v54  ;;  %v3443_v54 = vpack.c.bf16 %v680_v51, %v679_v49  ;;  %v3445_v55 = vpack.c.bf16 %v698_v53, %v697_v52  ;;  %v683_v62 = vld [vmem:[%s3937_s9 + $0x20] sm:$0xff]  ;;  %v684_v63 = vld [vmem:[%s3937_s9 + $0x28] sm:$0xff]  ;;  %v701_v2 = vld [vmem:[%s3937_s9 + $0xb0] sm:$0xff] }
 0x13a   :  { %2278 = vmatprep.subr.bf16.mxu0 %v3432_v50  ;;  %v702_v3 = vld [vmem:[%s3937_s9 + $0xb8] sm:$0xff]  ;;  %v685_v8 = vld [vmem:[%s3937_s9 + $0x30] sm:$0xff]  ;;  %v703_v10 = vld [vmem:[%s3937_s9 + $0xc0] sm:$0xff] }
 0x13b   :  { %v686_v9 = vld [vmem:[%s3937_s9 + $0x38] sm:$0xff]  ;;  %v704_v11 = vld [vmem:[%s3937_s9 + $0xc8] sm:$0xff]  ;;  %v687_v16 = vld [vmem:[%s3937_s9 + $0x40] sm:$0xff] }
 0x13c   :  { %v3497_v14 = vpack.c.bf16 %v686_v9, %v685_v8  ;;  %v3500_v15 = vpack.c.bf16 %v704_v11, %v703_v10  ;;  %v688_v17 = vld [vmem:[%s3937_s9 + $0x48] sm:$0xff]  ;;  %v705_v20 = vld [vmem:[%s3937_s9 + $0xd0] sm:$0xff]  ;;  %v706_v21 = vld [vmem:[%s3937_s9 + $0xd8] sm:$0xff] }
 0x13d   :  { %v3515_v22 = vpack.c.bf16 %v688_v17, %v687_v16  ;;  %v3518_v23 = vpack.c.bf16 %v706_v21, %v705_v20  ;;  %v689_v26 = vld [vmem:[%s3937_s9 + $0x50] sm:$0xff]  ;;  %v690_v27 = vld [vmem:[%s3937_s9 + $0x58] sm:$0xff]  ;;  %v524_v17 = vld [vmem:[%s3941_s13 + $0x20] sm:$0xff] }
 0x13e   :  { %v3527_v28 = vpack.c.bf16 %v690_v27, %v689_v26  ;;  %v3534_v34 = vld [vmem:[#allocation8] sm:$0x7]  ;;  %v592_v51 = vld [vmem:[#allocation10] sm:$0x3]  ;;  %v525_v20 = vld [vmem:[%s3941_s13 + $0x28] sm:$0xff] }
 0x13f   :  { %v357_v35 = vrot.slane %v3534_v34, %v356_v33  ;;  %v597_v52 = vrot.slane %v592_v51, %v356_v33  ;;  %v601_v53 = vrot.slane %v592_v51, %v360_v48  ;;  %v2404_v21 = vpack.c.bf16 %v525_v20, %v524_v17  ;;  %v528_v27 = vld [vmem:[%s3941_s13 + $0x40] sm:$0xff]  ;;  %v530_v33 = vld [vmem:[%s3941_s13 + $0x50] sm:$0xff]  ;;  %v547_v51 = vld [vmem:[%s3941_s13 + $0xd8] sm:$0xff] }
 0x140   :  { %v1079_v17 = vld [vmem:[#allocation11 + $0x10] sm:$0xff]  ;;  %v1080_v20 = vld [vmem:[#allocation11 + $0x18] sm:$0xff] }
 0x1fb   :  { %v316_v59 = vpop.f32.mrb[0].mxu0 }
 0x1fc   :  { %v317_v60 = vadd.f32 %v1734_v58, %v316_v59  ;;  %v1957_v61 = vpop.f32.mrb[1].mxu0  ;;  %v699_v58 = vld [vmem:[%s3937_s9 + $0xa0] sm:$0xff]  ;;  %v700_v59 = vld [vmem:[%s3937_s9 + $0xa8] sm:$0xff] }
 0x1fd   :  { %v3464_v61 = vpack.c.bf16 %v700_v59, %v699_v58 }
 0x1fe   :  { %v320_v4 = vmul.f32 0.01, %v317_v60 }
 0x200   :  { %v321_v6 = vmax.f32 %v317_v60, %v320_v4  ;;  %v3479_v4 = vpack.c.bf16 %v684_v63, %v683_v62 }
 0x202   :  { %1736 = vmatmul.mubr.msk.f32.vlgmr.msra.gmra.mrb[0].mxu1 %vm369_vm2, %v321_v6  ;;  %1979 = vmatmul.mubr.msk.f32.vlgmr.msra.gmra.mrb[2].mxu0 %vm369_vm2, %v321_v6  ;;  %v3482_v6 = vpack.c.bf16 %v702_v3, %v701_v2 }
 0x203   :  { %2248 = vmatpush1.bf16.msra.mxu1 %v3298_v5  ;;  %668 = vmatprep.mubr.f32.mxu1 %v2884_v1 }
 0x204   :  { %2250 = vmatprep.subr.bf16.mxu1 %v3300_v7  ;;  %2280 = vmatpush3.bf16.msra.mxu0 %v3443_v54 }
 0x205   :  { %2282 = vmatprep.subr.bf16.mxu0 %v3445_v55 }
 0x207   :  { %2252 = vmatpush1.bf16.msra.mxu1 %v3315_v12 }
 0x208   :  { %2254 = vmatprep.subr.bf16.mxu1 %v3319_v13 }
 0x20b   :  { %2256 = vmatpush1.bf16.msra.mxu1 %v3334_v18 }
 0x20c   :  { %2258 = vmatprep.subr.bf16.mxu1 %v3337_v19 }
 0x20f   :  { %2260 = vmatpush1.bf16.msra.mxu1 %v3352_v24 }
 0x210   :  { %2262 = vmatprep.subr.bf16.mxu1 %v3355_v25 }
 0x213   :  { %2264 = vmatpush1.bf16.msra.mxu1 %v3370_v30 }
 0x214   :  { %2266 = vmatprep.subr.bf16.mxu1 %v3373_v31 }
 0x217   :  { %2268 = vmatpush1.bf16.msra.mxu1 %v3388_v36 }
 0x218   :  { %2270 = vmatprep.subr.bf16.mxu1 %v3391_v37 }
 0x21b   :  { %2272 = vmatpush1.bf16.msra.mxu1 %v3400_v40 }
 0x21c   :  { %2274 = vmatprep.subr.bf16.mxu1 %v3410_v43 }
 0x21f   :  { %2276 = vmatpush1.bf16.msra.mxu1 %v3418_v46 }
 0x220   :  { %2310 = vmatprep.subr.bf16.mxu1 %v3283_v57  ;;  %v682_v57 = vld [vmem:[%s3937_s9 + $0x18] sm:$0xff] }
 0x221   :  { %v3461_v60 = vpack.c.bf16 %v682_v57, %v681_v56 }
 0x223   :  { %2284 = vmatpush3.bf16.msra.mxu0 %v3461_v60 }
 0x224   :  { %2286 = vmatprep.subr.bf16.mxu0 %v3464_v61 }
 0x227   :  { %2288 = vmatpush3.bf16.msra.mxu0 %v3479_v4 }
 0x228   :  { %2290 = vmatprep.subr.bf16.mxu0 %v3482_v6 }
 0x22b   :  { %2292 = vmatpush3.bf16.msra.mxu0 %v3497_v14 }
 0x22c   :  { %2294 = vmatprep.subr.bf16.mxu0 %v3500_v15 }
 0x22f   :  { %2296 = vmatpush3.bf16.msra.mxu0 %v3515_v22 }
 0x230   :  { %2298 = vmatprep.subr.bf16.mxu0 %v3518_v23 }
 0x233   :  { %2300 = vmatpush3.bf16.msra.mxu0 %v3527_v28 }
 0x2d5   :  { %v439_v38 = vpop.f32.mrb[0].mxu1  ;;  %v3537_v39 = vpop.f32.mrb[2].mxu0 }
 0x2d6   :  { %v440_v41 = vadd.f32 %v439_v38, %v357_v35  ;;  %v441_v42 = vpop.f32.mrb[1].mxu1  ;;  %v1980_v44 = vpop.f32.mrb[3].mxu0  ;;  %v531_v35 = vld [vmem:[%s3941_s13 + $0x58] sm:$0xff] }
 0x2d7   :  { %v2413_v38 = vpack.c.bf16 %v531_v35, %v530_v33 }
 0x2d8   :  { %v514_v45 = vmul.f32 0.01, %v440_v41 }
 0x2da   :  { %v517_v47 = vmax.f32 %v440_v41, %v514_v45  ;;  %v532_v41 = vld [vmem:[%s3941_s13 + $0x60] sm:$0xff]  ;;  %v534_v45 = vld [vmem:[%s3941_s13 + $0x70] sm:$0xff] }
 0x2dc   :  { %669 = vmatmul.mubr.f32.vlgmr.msra.gmra.mrb[2].mxu1 %v517_v47  ;;  %v535_v47 = vld [vmem:[%s3941_s13 + $0x78] sm:$0xff] }
 0x2dd   :  { %2312 = vmatpush1.bf16.msra.mxu1 %v3298_v5  ;;  %854 = vmatprep.mubr.f32.mxu1 %v2884_v1  ;;  %v361_v5 = vrot.slane %v3534_v34, %v360_v48  ;;  %v2419_v48 = vpack.c.bf16 %v535_v47, %v534_v45  ;;  %v1172_v47 = vld [vmem:[%s3939_s11 + $0x20] sm:$0xff] }
 0x2de   :  { %2314 = vmatprep.subr.bf16.mxu1 %v3300_v7 }
 0x2df   :  { %v442_v7 = vadd.f32 %v441_v42, %v361_v5  ;;  %v533_v42 = vld [vmem:[%s3941_s13 + $0x68] sm:$0xff]  ;;  %v536_v5 = vld [vmem:[%s3941_s13 + $0x80] sm:$0xff] }
 0x2e0   :  { %v2416_v44 = vpack.c.bf16 %v533_v42, %v532_v41  ;;  %v1170_v41 = vld [vmem:[%s3939_s11 + $0x10] sm:$0xff] }
 0x2e1   :  { %2316 = vmatpush1.bf16.msra.mxu1 %v3315_v12  ;;  %v515_v12 = vmul.f32 0.01, %v442_v7 }
 0x2e2   :  { %2318 = vmatprep.subr.bf16.mxu1 %v3319_v13 }
 0x2e3   :  { %v518_v13 = vmax.f32 %v442_v7, %v515_v12  ;;  %v537_v7 = vld [vmem:[%s3941_s13 + $0x88] sm:$0xff] }
 0x2e4   :  { %v2374_v12 = vpack.c.bf16 %v537_v7, %v536_v5  ;;  %v1174_v7 = vld [vmem:[%s3939_s11 + $0x30] sm:$0xff] }
 0x2e5   :  { %2320 = vmatpush1.bf16.msra.mxu1 %v3334_v18  ;;  %v707_v18 = vld [vmem:[%s3937_s9 + $0xe0] sm:$0xff] }
 0x2e6   :  { %2322 = vmatprep.subr.bf16.mxu1 %v3337_v19  ;;  %v708_v19 = vld [vmem:[%s3937_s9 + $0xe8] sm:$0xff] }
 0x2e9   :  { %2324 = vmatpush1.bf16.msra.mxu1 %v3352_v24  ;;  %v2301_v24 = vpack.c.bf16 %v708_v19, %v707_v18  ;;  %v539_v18 = vld [vmem:[%s3941_s13 + $0x98] sm:$0xff] }
 0x2ea   :  { %2326 = vmatprep.subr.bf16.mxu1 %v3355_v25  ;;  %v691_v25 = vld [vmem:[%s3937_s9 + $0x60] sm:$0xff] }
 0x2eb   :  { %2302 = vmatprep.subr.bf16.mxu0 %v2301_v24 }
 0x2ed   :  { %2328 = vmatpush1.bf16.msra.mxu1 %v3370_v30  ;;  %v692_v30 = vld [vmem:[%s3937_s9 + $0x68] sm:$0xff] }
 0x2ee   :  { %2330 = vmatprep.subr.bf16.mxu1 %v3373_v31  ;;  %v2303_v31 = vpack.c.bf16 %v692_v30, %v691_v25  ;;  %v541_v25 = vld [vmem:[%s3941_s13 + $0xa8] sm:$0xff] }
 0x2f0   :  { %2304 = vmatpush3.bf16.msra.mxu0 %v2303_v31 }
 0x2f1   :  { %2332 = vmatpush1.bf16.msra.mxu1 %v3388_v36  ;;  %v709_v36 = vld [vmem:[%s3937_s9 + $0xf0] sm:$0xff] }
 0x2f2   :  { %2334 = vmatprep.subr.bf16.mxu1 %v3391_v37  ;;  %v710_v37 = vld [vmem:[%s3937_s9 + $0xf8] sm:$0xff] }
 0x2f5   :  { %2336 = vmatpush1.bf16.msra.mxu1 %v3400_v40  ;;  %v2305_v40 = vpack.c.bf16 %v710_v37, %v709_v36  ;;  %v543_v36 = vld [vmem:[%s3941_s13 + $0xb8] sm:$0xff] }
 0x2f6   :  { %2338 = vmatprep.subr.bf16.mxu1 %v3410_v43  ;;  %v693_v43 = vld [vmem:[%s3937_s9 + $0x70] sm:$0xff] }
 0x2f7   :  { %2306 = vmatprep.subr.bf16.mxu0 %v2305_v40 }
 0x2f9   :  { %2340 = vmatpush1.bf16.msra.mxu1 %v3418_v46  ;;  %v694_v46 = vld [vmem:[%s3937_s9 + $0x78] sm:$0xff] }
 0x2fa   :  { %2373 = vmatprep.subr.bf16.mxu1 %v2882_v0  ;;  %v2307_v49 = vpack.c.bf16 %v694_v46, %v693_v43  ;;  %v545_v43 = vld [vmem:[%s3941_s13 + $0xc8] sm:$0xff] }
 0x2fc   :  { %855 = vmatmul.mubr.f32.vlgmr.msra.gmra.mrb[4].mxu1 %v518_v13  ;;  %2308 = vmatpush3.bf16.msra.mxu0 %v2307_v49  ;;  %v538_v13 = vld [vmem:[%s3941_s13 + $0x90] sm:$0xff] }
 0x2fd   :  { %2013 = vmatprep.mubr.msk.f32.mxu1 %vm2883_vm0, %v2884_v1  ;;  %2342 = vmatprep.subr.bf16.mxu0 %v3432_v50  ;;  %v2377_v19 = vpack.c.bf16 %v539_v18, %v538_v13  ;;  %v1176_v13 = vld [vmem:[%s3939_s11 + $0x40] sm:$0xff] }
 0x2fe   :  { %2375 = vmatpush3.bf16.msra.mxu1 %v2374_v12  ;;  %v1175_v12 = vld [vmem:[%s3939_s11 + $0x38] sm:$0xff] }
 0x2ff   :  { %2376 = vmatprep.subr.bf16.mxu1 %v2882_v0  ;;  %v2443_v18 = vpack.c.bf16 %v1175_v12, %v1174_v7  ;;  %v1438_v12 = vld [vmem:[#allocation22 + $0x30] sm:$0xff] }
 0x302   :  { %2378 = vmatpush3.bf16.msra.mxu1 %v2377_v19  ;;  %v1177_v19 = vld [vmem:[%s3939_s11 + $0x48] sm:$0xff] }
 0x303   :  { %2379 = vmatprep.subr.bf16.mxu1 %v2882_v0 }
 0x3af   :  { %v670_v56 = vpop.f32.mrb[2].mxu1 }
 0x3b0   :  { %v671_v57 = vadd.f32 %v670_v56, %v597_v52  ;;  %v672_v58 = vpop.f32.mrb[3].mxu1  ;;  %v549_v56 = vld [vmem:[%s3941_s13 + $0xe8] sm:$0xff] }
 0x3b1   :  { %v673_v59 = vadd.f32 %v672_v58, %v601_v53  ;;  %v550_v58 = vld [vmem:[%s3941_s13 + $0xf0] sm:$0xff] }
 0x3b2   :  { %v675_v62 = vmul.f32 0.01, %v671_v57 }
 0x3b3   :  { %v676_v63 = vmul.f32 0.01, %v673_v59 }
 0x3b4   :  { %v677_v3 = vmax.f32 %v671_v57, %v675_v62 }
 0x3b5   :  { %v678_v2 = vmax.f32 %v673_v59, %v676_v63  ;;  %v551_v59 = vld [vmem:[%s3941_s13 + $0xf8] sm:$0xff] }
 0x3b6   :  { %v2395_v62 = vpack.c.bf16 %v551_v59, %v550_v58 }
 0x3b7   :  { %782 = vmatprep.mubr.f32.mxu0 %v678_v2  ;;  %v1738_v2 = vld [vmem:[#allocation14] ss:$0 sm:$0xff] }
 0x3b8   :  { %783 = vmatmul.mubr.f32.vlgmr.msra.gmra.mrb[4].mxu0 %v677_v3 }
 0x3b9   :  { %2344 = vmatpush3.bf16.msra.mxu0 %v3443_v54 }
 0x3ba   :  { %2346 = vmatprep.subr.bf16.mxu0 %v3445_v55 }
 0x3bd   :  { %2348 = vmatpush3.bf16.msra.mxu0 %v3461_v60 }
 0x3be   :  { %2350 = vmatprep.subr.bf16.mxu0 %v3464_v61 }
 0x3c1   :  { %2352 = vmatpush3.bf16.msra.mxu0 %v3479_v4  ;;  %v520_v4 = vld [vmem:[%s3941_s13] sm:$0xff] }
 0x3c2   :  { %2354 = vmatprep.subr.bf16.mxu0 %v3482_v6  ;;  %v521_v6 = vld [vmem:[%s3941_s13 + $0x8] sm:$0xff] }
 0x3c3   :  { %v2398_v10 = vpack.c.bf16 %v521_v6, %v520_v4 }
 0x3c5   :  { %2356 = vmatpush3.bf16.msra.mxu0 %v3497_v14  ;;  %v522_v14 = vld [vmem:[%s3941_s13 + $0x10] sm:$0xff] }
 0x3c6   :  { %2358 = vmatprep.subr.bf16.mxu0 %v3500_v15  ;;  %v523_v15 = vld [vmem:[%s3941_s13 + $0x18] sm:$0xff] }
 0x3c7   :  { %v2401_v16 = vpack.c.bf16 %v523_v15, %v522_v14  ;;  %v364_v15 = vsub.s32 2, %v3531_v32  ;;  %v1083_v32 = vld [vmem:[#allocation11 + $0x30] sm:$0xff] }
 0x3c9   :  { %2360 = vmatpush3.bf16.msra.mxu0 %v3515_v22  ;;  %v526_v22 = vld [vmem:[%s3941_s13 + $0x30] sm:$0xff] }
 0x3ca   :  { %2362 = vmatprep.subr.bf16.mxu0 %v3518_v23  ;;  %v527_v23 = vld [vmem:[%s3941_s13 + $0x38] sm:$0xff] }
 0x3cb   :  { %v2407_v26 = vpack.c.bf16 %v527_v23, %v526_v22  ;;  %v365_v22 = vrot.slane %v3534_v34, %v364_v15  ;;  %v1081_v23 = vld [vmem:[#allocation11 + $0x20] sm:$0xff] }
 0x3cc   :  { %v1741_v15 = vld [vmem:[#allocation16] ss:$0 sm:$0xff] }
 0x3cd   :  { %2364 = vmatpush3.bf16.msra.mxu0 %v3527_v28  ;;  %v529_v28 = vld [vmem:[%s3941_s13 + $0x48] sm:$0xff] }
 0x3ce   :  { %2366 = vmatprep.subr.bf16.mxu0 %v2301_v24  ;;  %v2410_v29 = vpack.c.bf16 %v529_v28, %v528_v27  ;;  %v540_v24 = vld [vmem:[%s3941_s13 + $0xa0] sm:$0xff]  ;;  %v511_v28 = vadd.f32 %v3537_v39, %v365_v22 }
 0x3cf   :  { %v856_v50 = vpop.f32.mrb[4].mxu1  ;;  %v2380_v30 = vpack.c.bf16 %v541_v25, %v540_v24  ;;  %v1168_v39 = vld [vmem:[%s3939_s11] sm:$0xff]  ;;  %v2446_v24 = vpack.c.bf16 %v1177_v19, %v1176_v13  ;;  %v1178_v25 = vld [vmem:[%s3939_s11 + $0x50] sm:$0xff] }
 0x3d0   :  { %v857_v54 = vadd.f32 %v856_v50, %v597_v52  ;;  %v858_v55 = vpop.f32.mrb[5].mxu1  ;;  %v516_v35 = vmul.f32 0.01, %v511_v28  ;;  %v1439_v13 = vld [vmem:[#allocation22 + $0x38] sm:$0xff]  ;;  %v1522_v19 = vld [vmem:[%s3947_s19] sm:$0xff] }
 0x3d1   :  { %v859_v60 = vadd.f32 %v858_v55, %v601_v53  ;;  %2368 = vmatpush3.bf16.msra.mxu0 %v2303_v31  ;;  %v542_v31 = vld [vmem:[%s3941_s13 + $0xb0] sm:$0xff]  ;;  %2381 = vmatpush3.bf16.msra.mxu1 %v2380_v30  ;;  %v548_v53 = vld [vmem:[%s3941_s13 + $0xe0] sm:$0xff]  ;;  %v1179_v30 = vld [vmem:[%s3939_s11 + $0x58] sm:$0xff] }
 0x3d2   :  { %v861_v61 = vmul.f32 0.01, %v857_v54  ;;  %2370 = vmatprep.subr.bf16.mxu0 %v2305_v40  ;;  %v2383_v37 = vpack.c.bf16 %v543_v36, %v542_v31  ;;  %2382 = vmatprep.subr.bf16.mxu1 %v2882_v0  ;;  %v544_v40 = vld [vmem:[%s3941_s13 + $0xc0] sm:$0xff]  ;;  %v2392_v57 = vpack.c.bf16 %v549_v56, %v548_v53  ;;  %v519_v34 = vmax.f32 %v511_v28, %v516_v35  ;;  %v554_v53 = vld [vmem:[%s3941_s13 + $0x110] sm:$0xff] }
 0x3d3   :  { %v862_v8 = vmul.f32 0.01, %v859_v60  ;;  %v2386_v46 = vpack.c.bf16 %v545_v43, %v544_v40  ;;  %v2449_v31 = vpack.c.bf16 %v1179_v30, %v1178_v25  ;;  %v1180_v36 = vld [vmem:[%s3939_s11 + $0x60] sm:$0xff]  ;;  %v1182_v43 = vld [vmem:[%s3939_s11 + $0x70] sm:$0xff] }
 0x3d4   :  { %v863_v11 = vmax.f32 %v857_v54, %v861_v61  ;;  %v1524_v25 = vld [vmem:[%s3947_s19 + $0x10] sm:$0xff] }
 0x3d5   :  { %v864_v9 = vmax.f32 %v859_v60, %v862_v8  ;;  %2372 = vmatpush3.bf16.msra.mxu0 %v2307_v49  ;;  %2384 = vmatpush3.bf16.msra.mxu1 %v2383_v37  ;;  %v546_v49 = vld [vmem:[%s3941_s13 + $0xd0] sm:$0xff]  ;;  %v1181_v37 = vld [vmem:[%s3939_s11 + $0x68] sm:$0xff] }
 0x3d6   :  { %2397 = vmatprep.subr.bf16.mxu0 %v2882_v0  ;;  %2385 = vmatprep.subr.bf16.mxu1 %v2882_v0  ;;  %v2389_v52 = vpack.c.bf16 %v547_v51, %v546_v49  ;;  %v2452_v40 = vpack.c.bf16 %v1181_v37, %v1180_v36  ;;  %v552_v51 = vld [vmem:[%s3941_s13 + $0x100] sm:$0xff] }
 0x3d7   :  { %929 = vmatprep.mubr.f32.mxu0 %v864_v9  ;;  %v1077_v9 = vld [vmem:[#allocation11] sm:$0xff]  ;;  %v1526_v37 = vld [vmem:[%s3947_s19 + $0x20] sm:$0xff] }
 0x3d8   :  { %930 = vmatmul.mubr.f32.vlgmr.msra.gmra.mrb[6].mxu0 %v863_v11 }
 0x3d9   :  { %2399 = vmatpush3.bf16.msra.mxu0 %v2398_v10  ;;  %2048 = vmatprep.mubr.msk.f32.mxu0 %vm2883_vm0, %v2884_v1  ;;  %v1078_v10 = vld [vmem:[#allocation11 + $0x8] sm:$0xff] }
 0x3da   :  { %2400 = vmatprep.subr.bf16.mxu0 %v2882_v0  ;;  %2387 = vmatpush3.bf16.msra.mxu1 %v2386_v46  ;;  %v2422_v14 = vpack.c.bf16 %v1078_v10, %v1077_v9  ;;  %v1183_v46 = vld [vmem:[%s3939_s11 + $0x78] sm:$0xff]  ;;  %v558_v10 = vld [vmem:[%s3941_s13 + $0x130] sm:$0xff] }
 0x3db   :  { %2388 = vmatprep.subr.bf16.mxu1 %v2882_v0  ;;  %v2455_v49 = vpack.c.bf16 %v1183_v46, %v1182_v43  ;;  %v1528_v46 = vld [vmem:[%s3947_s19 + $0x30] sm:$0xff] }
 0x3dd   :  { %2402 = vmatpush3.bf16.msra.mxu0 %v2401_v16 }
 0x3de   :  { %2403 = vmatprep.subr.bf16.mxu0 %v2882_v0  ;;  %2390 = vmatpush3.bf16.msra.mxu1 %v2389_v52  ;;  %v553_v52 = vld [vmem:[%s3941_s13 + $0x108] sm:$0xff] }
 0x3df   :  { %2391 = vmatprep.subr.bf16.mxu1 %v2882_v0  ;;  %v2458_v56 = vpack.c.bf16 %v553_v52, %v552_v51  ;;  %v1530_v52 = vld [vmem:[%s3947_s19 + $0x40] sm:$0xff] }
 0x3e1   :  { %2405 = vmatpush3.bf16.msra.mxu0 %v2404_v21  ;;  %v2425_v21 = vpack.c.bf16 %v1080_v20, %v1079_v17 }
 0x3e2   :  { %2406 = vmatprep.subr.bf16.mxu0 %v2882_v0  ;;  %2393 = vmatpush3.bf16.msra.mxu1 %v2392_v57  ;;  %v555_v57 = vld [vmem:[%s3941_s13 + $0x118] sm:$0xff] }
 0x3e3   :  { %2394 = vmatprep.subr.bf16.mxu1 %v2882_v0  ;;  %v2461_v58 = vpack.c.bf16 %v555_v57, %v554_v53  ;;  %v1531_v53 = vld [vmem:[%s3947_s19 + $0x48] sm:$0xff]  ;;  %v1532_v57 = vld [vmem:[%s3947_s19 + $0x50] sm:$0xff] }
 0x3e5   :  { %2408 = vmatpush3.bf16.msra.mxu0 %v2407_v26  ;;  %v1082_v26 = vld [vmem:[#allocation11 + $0x28] sm:$0xff] }
 0x3e6   :  { %2409 = vmatprep.subr.bf16.mxu0 %v2882_v0  ;;  %2396 = vmatpush3.bf16.msra.mxu1 %v2395_v62  ;;  %v2428_v27 = vpack.c.bf16 %v1082_v26, %v1081_v23  ;;  %v1347_v23 = vld [vmem:[#allocation19] sm:$0xff]  ;;  %v1348_v26 = vld [vmem:[#allocation19 + $0x8] sm:$0xff] }
 0x3e7   :  { %2421 = vmatprep.subr.bf16.mxu1 %v2882_v0 }
 0x3e9   :  { %2411 = vmatpush3.bf16.msra.mxu0 %v2410_v29  ;;  %v1084_v29 = vld [vmem:[#allocation11 + $0x38] sm:$0xff] }
 0x3ea   :  { %2412 = vmatprep.subr.bf16.mxu0 %v2882_v0  ;;  %v2431_v33 = vpack.c.bf16 %v1084_v29, %v1083_v32  ;;  %v1743_v32 = vld [vmem:[#allocation17] ss:$0 sm:$0xff] }
 0x3ed   :  { %2414 = vmatpush3.bf16.msra.mxu0 %v2413_v38  ;;  %v1169_v38 = vld [vmem:[%s3939_s11 + $0x8] sm:$0xff] }
 0x3ee   :  { %2415 = vmatprep.subr.bf16.mxu0 %v2882_v0  ;;  %v2434_v42 = vpack.c.bf16 %v1169_v38, %v1168_v39  ;;  %v1433_v39 = vld [vmem:[#allocation22 + $0x8] sm:$0xff] }
 0x3f1   :  { %2417 = vmatpush3.bf16.msra.mxu0 %v2416_v44  ;;  %v1171_v44 = vld [vmem:[%s3939_s11 + $0x18] sm:$0xff] }
 0x3f2   :  { %2418 = vmatprep.subr.bf16.mxu0 %v2882_v0  ;;  %v2437_v45 = vpack.c.bf16 %v1171_v44, %v1170_v41  ;;  %v1434_v44 = vld [vmem:[#allocation22 + $0x10] sm:$0xff] }
 0x3f5   :  { %2420 = vmatpush3.bf16.msra.mxu0 %v2419_v48  ;;  %v1173_v48 = vld [vmem:[%s3939_s11 + $0x28] sm:$0xff] }
 0x3f6   :  { %2433 = vmatprep.subr.bf16.mxu0 %v2882_v0  ;;  %v2440_v5 = vpack.c.bf16 %v1173_v48, %v1172_v47  ;;  %v1436_v48 = vld [vmem:[#allocation22 + $0x20] sm:$0xff] }
 0x48b   :  { %v1800_v63 = vpop.f32.mrb[4].mxu0 }
 0x48c   :  { %v1801_v3 = vpop.f32.mrb[5].mxu0 }
 0x48d   :  { %v1802_v50 = vadd.f32 %v1801_v3, %v1800_v63 }
 0x48f   :  { %v785_v54 = vadd.f32 %v1802_v50, %v1738_v2  ;;  %v1739_v50 = vld [vmem:[#allocation13] ss:$0 sm:$0xff] }
 0x491   :  { %v788_v55 = vmul.f32 0.01, %v785_v54 }
 0x493   :  { %v789_v60 = vmax.f32 %v785_v54, %v788_v55 }
 0x495   :  { %2049 = vmatmul.mubr.f32.vlgmr.msra.gmra.mrb[8].mxu0 %v789_v60 }
 0x496   :  { %2102 = vmatprep.mubr.msk.f32.mxu0 %vm2883_vm0, %v2884_v1  ;;  %2435 = vmatpush3.bf16.msra.mxu0 %v2434_v42 }
 0x497   :  { %2436 = vmatprep.subr.bf16.mxu0 %v2882_v0 }
 0x49a   :  { %2438 = vmatpush3.bf16.msra.mxu0 %v2437_v45  ;;  %v1435_v45 = vld [vmem:[#allocation22 + $0x18] sm:$0xff] }
 0x49b   :  { %2439 = vmatprep.subr.bf16.mxu0 %v2882_v0  ;;  %v2476_v47 = vpack.c.bf16 %v1435_v45, %v1434_v44 }
 0x49e   :  { %2441 = vmatpush3.bf16.msra.mxu0 %v2440_v5  ;;  %v1437_v5 = vld [vmem:[#allocation22 + $0x28] sm:$0xff] }
 0x49f   :  { %2442 = vmatprep.subr.bf16.mxu0 %v2882_v0  ;;  %v2479_v7 = vpack.c.bf16 %v1437_v5, %v1436_v48 }
 0x4a2   :  { %2444 = vmatpush3.bf16.msra.mxu0 %v2443_v18  ;;  %v2482_v18 = vpack.c.bf16 %v1439_v13, %v1438_v12 }
 0x4a3   :  { %2445 = vmatprep.subr.bf16.mxu0 %v2882_v0 }
 0x4a6   :  { %2447 = vmatpush3.bf16.msra.mxu0 %v2446_v24  ;;  %v1523_v24 = vld [vmem:[%s3947_s19 + $0x8] sm:$0xff] }
 0x4a7   :  { %2448 = vmatprep.subr.bf16.mxu0 %v2882_v0  ;;  %v2485_v30 = vpack.c.bf16 %v1523_v24, %v1522_v19 }
 0x4aa   :  { %2450 = vmatpush3.bf16.msra.mxu0 %v2449_v31  ;;  %v1525_v31 = vld [vmem:[%s3947_s19 + $0x18] sm:$0xff] }
 0x4ab   :  { %v1835_v61 = vpop.f32.mrb[6].mxu0  ;;  %2451 = vmatprep.subr.bf16.mxu0 %v2882_v0  ;;  %v2488_v36 = vpack.c.bf16 %v1525_v31, %v1524_v25 }
 0x4ac   :  { %v1836_v4 = vpop.f32.mrb[7].mxu0 }
 0x4ad   :  { %v1837_v6 = vadd.f32 %v1836_v4, %v1835_v61 }
 0x4ae   :  { %2453 = vmatpush3.bf16.msra.mxu0 %v2452_v40  ;;  %v1527_v40 = vld [vmem:[%s3947_s19 + $0x28] sm:$0xff] }
 0x4af   :  { %v932_v8 = vadd.f32 %v1837_v6, %v1738_v2  ;;  %2454 = vmatprep.subr.bf16.mxu0 %v2882_v0  ;;  %v556_v6 = vld [vmem:[%s3941_s13 + $0x120] sm:$0xff]  ;;  %v2491_v43 = vpack.c.bf16 %v1527_v40, %v1526_v37 }
 0x4b1   :  { %v935_v11 = vmul.f32 0.01, %v932_v8 }
 0x4b2   :  { %2456 = vmatpush3.bf16.msra.mxu0 %v2455_v49  ;;  %v1529_v49 = vld [vmem:[%s3947_s19 + $0x38] sm:$0xff] }
 0x4b3   :  { %v936_v16 = vmax.f32 %v932_v8, %v935_v11  ;;  %2484 = vmatprep.subr.bf16.mxu0 %v2882_v0  ;;  %v557_v8 = vld [vmem:[%s3941_s13 + $0x128] sm:$0xff]  ;;  %v559_v11 = vld [vmem:[%s3941_s13 + $0x138] sm:$0xff]  ;;  %v2494_v51 = vpack.c.bf16 %v1529_v49, %v1528_v46 }
 0x4b4   :  { %v2464_v9 = vpack.c.bf16 %v557_v8, %v556_v6  ;;  %v1617_v8 = vld [vmem:[%s3949_s21] sm:$0xff] }
 0x4b5   :  { %2014 = vmatmul.mubr.f32.vlgmr.msra.gmra.mrb[6].mxu1 %v936_v16 }
 0x4b6   :  { %2423 = vmatpush3.bf16.msra.mxu1 %v2422_v14  ;;  %2067 = vmatprep.mubr.msk.f32.mxu1 %vm2883_vm0, %v2884_v1  ;;  %v2467_v14 = vpack.c.bf16 %v559_v11, %v558_v10  ;;  %v1619_v10 = vld [vmem:[%s3949_s21 + $0x10] sm:$0xff] }
 0x4b7   :  { %2424 = vmatprep.subr.bf16.mxu1 %v2882_v0 }
 0x4ba   :  { %2426 = vmatpush3.bf16.msra.mxu1 %v2425_v21 }
 0x4bb   :  { %2427 = vmatprep.subr.bf16.mxu1 %v2882_v0 }
 0x4be   :  { %2429 = vmatpush3.bf16.msra.mxu1 %v2428_v27  ;;  %v2470_v27 = vpack.c.bf16 %v1348_v26, %v1347_v23  ;;  %v1621_v26 = vld [vmem:[%s3949_s21 + $0x20] sm:$0xff] }
 0x4bf   :  { %2430 = vmatprep.subr.bf16.mxu1 %v2882_v0 }
 0x4c2   :  { %2432 = vmatpush3.bf16.msra.mxu1 %v2431_v33 }
 0x4c3   :  { %2457 = vmatprep.subr.bf16.mxu1 %v2882_v0 }
 0x4c5   :  { %2068 = vmatmul.mubr.msk.f32.vlgmr.msra.gmra.mrb[8].mxu1 %vm1092_vm3, %v519_v34  ;;  %v1432_v34 = vld [vmem:[#allocation22] sm:$0xff] }
 0x4c6   :  { %2121 = vmatprep.mubr.msk.f32.mxu1 %vm2883_vm0, %v2884_v1  ;;  %2459 = vmatpush3.bf16.msra.mxu1 %v2458_v56  ;;  %v2473_v41 = vpack.c.bf16 %v1433_v39, %v1432_v34  ;;  %v2497_v56 = vpack.c.bf16 %v1531_v53, %v1530_v52 }
 0x4c7   :  { %2460 = vmatprep.subr.bf16.mxu1 %v2882_v0 }
 0x4ca   :  { %2462 = vmatpush3.bf16.msra.mxu1 %v2461_v58  ;;  %v1533_v58 = vld [vmem:[%s3947_s19 + $0x58] sm:$0xff] }
 0x4cb   :  { %2463 = vmatprep.subr.bf16.mxu1 %v2882_v0 }
 0x4ce   :  { %2465 = vmatpush3.bf16.msra.mxu1 %v2464_v9  ;;  %v1618_v9 = vld [vmem:[%s3949_s21 + $0x8] sm:$0xff] }
 0x4cf   :  { %2466 = vmatprep.subr.bf16.mxu1 %v2882_v0  ;;  %v2509_v11 = vpack.c.bf16 %v1618_v9, %v1617_v8 }
 0x4d2   :  { %2468 = vmatpush3.bf16.msra.mxu1 %v2467_v14  ;;  %v1620_v14 = vld [vmem:[%s3949_s21 + $0x18] sm:$0xff] }
 0x4d3   :  { %2469 = vmatprep.subr.bf16.mxu1 %v2882_v0 }
 0x568   :  { %v1073_v59 = vpop.f32.mrb[8].mxu0 }
 0x569   :  { %v2050_v62 = vpop.f32.mrb[9].mxu0 }
 0x56a   :  { %v1744_v62 = vld [vmem:[#allocation20] ss:$0 sm:$0xff] }
 0x588   :  { %v1003_v63 = vpop.f32.mrb[6].mxu1 }
 0x589   :  { %v1074_v2 = vadd.f32 %v1073_v59, %v1003_v63  ;;  %v2015_v3 = vpop.f32.mrb[7].mxu1  ;;  %v2500_v59 = vpack.c.bf16 %v1533_v58, %v1532_v57 }
 0x598   :  { %v1162_v54 = vpop.f32.mrb[8].mxu1 }
 0x599   :  { %v1163_v55 = vadd.f32 %v1739_v50, %v1162_v54  ;;  %v2069_v60 = vpop.f32.mrb[9].mxu1 }
 0x59a   :  { %v1535_v60 = vld [vmem:[%s3947_s19 + $0x68] sm:$0xff] }
 0x59b   :  { %v1166_v61 = vmul.f32 0.01, %v1163_v55 }
 0x59d   :  { %v1167_v4 = vmax.f32 %v1163_v55, %v1166_v61  ;;  %v1534_v55 = vld [vmem:[%s3947_s19 + $0x60] sm:$0xff] }
 0x59e   :  { %v2503_v61 = vpack.c.bf16 %v1535_v60, %v1534_v55 }
 0x59f   :  { %2103 = vmatmul.mubr.f32.vlgmr.msra.gmra.mrb[10].mxu0 %v1167_v4  ;;  %v1536_v4 = vld [vmem:[%s3947_s19 + $0x70] sm:$0xff] }
 0x5a0   :  { %2182 = vmatprep.mubr.msk.f32.mxu0 %vm2883_vm0, %v2884_v1  ;;  %2486 = vmatpush3.bf16.msra.mxu0 %v2485_v30 }
 0x5a1   :  { %2487 = vmatprep.subr.bf16.mxu0 %v2882_v0 }
 0x5a4   :  { %2489 = vmatpush3.bf16.msra.mxu0 %v2488_v36 }
 0x5a5   :  { %2490 = vmatprep.subr.bf16.mxu0 %v2882_v0 }
 0x5a8   :  { %2492 = vmatpush3.bf16.msra.mxu0 %v2491_v43 }
 0x5a9   :  { %2493 = vmatprep.subr.bf16.mxu0 %v2882_v0 }
 0x5ac   :  { %2495 = vmatpush3.bf16.msra.mxu0 %v2494_v51 }
 0x5ad   :  { %2496 = vmatprep.subr.bf16.mxu0 %v2882_v0 }
 0x5b0   :  { %2498 = vmatpush3.bf16.msra.mxu0 %v2497_v56 }
 0x5b1   :  { %2499 = vmatprep.subr.bf16.mxu0 %v2882_v0 }
 0x5b4   :  { %2501 = vmatpush3.bf16.msra.mxu0 %v2500_v59 }
 0x5b5   :  { %2502 = vmatprep.subr.bf16.mxu0 %v2882_v0 }
 0x5b8   :  { %2504 = vmatpush3.bf16.msra.mxu0 %v2503_v61 }
 0x5b9   :  { %2505 = vmatprep.subr.bf16.mxu0 %v2882_v0 }
 0x672   :  { %v1257_v16 = vpop.f32.mrb[10].mxu0 }
 0x673   :  { %v1258_v17 = vadd.f32 %v1741_v15, %v1257_v16  ;;  %v2104_v20 = vpop.f32.mrb[11].mxu0  ;;  %v2512_v15 = vpack.c.bf16 %v1620_v14, %v1619_v10  ;;  %v1746_v16 = vld [vmem:[%s3946_s18] ss:$0 sm:$0xff] }
 0x675   :  { %v1261_v21 = vmul.f32 0.01, %v1258_v17 }
 0x677   :  { %v1262_v22 = vmax.f32 %v1258_v17, %v1261_v21 }
 0x679   :  { %2122 = vmatmul.mubr.msk.f32.vlgmr.msra.gmra.mrb[10].mxu1 %vm1092_vm3, %v1262_v22 }
 0x67a   :  { %2128 = vmatprep.mubr.msk.f32.mxu1 %vm2883_vm0, %v2884_v1  ;;  %2471 = vmatpush3.bf16.msra.mxu1 %v2470_v27  ;;  %v1622_v27 = vld [vmem:[%s3949_s21 + $0x28] sm:$0xff] }
 0x67b   :  { %2472 = vmatprep.subr.bf16.mxu1 %v2882_v0 }
 0x74c   :  { %v1332_v28 = vpop.f32.mrb[10].mxu1 }
 0x74d   :  { %v1336_v29 = vadd.f32 %v1332_v28, %v1074_v2  ;;  %v2123_v33 = vpop.f32.mrb[11].mxu1  ;;  %v2515_v28 = vpack.c.bf16 %v1622_v27, %v1621_v26 }
 0x74f   :  { %v1344_v35 = vadd.f32 %v1743_v32, %v1336_v29  ;;  %v1623_v32 = vld [vmem:[%s3949_s21 + $0x30] sm:$0xff]  ;;  %v1624_v29 = vld [vmem:[%s3949_s21 + $0x38] sm:$0xff]  ;;  %s2885_s21 = smov [#allocation23]  }
 0x750   :  { %v2518_v33 = vpack.c.bf16 %v1624_v29, %v1623_v32  ;;  %s1719_s3 = sshll.u32 %s2885_s21, 4  ;;  %s1720_s3 = int_to_ptr.vmem [resolvable:$true] %s1719_s3 }
 0x751   :  { %v1345_v38 = vmul.f32 0.01, %v1344_v35  ;;  %s2829_s15 = scalar_lea.vmem %s1720_s3, 128  ;;  %p2834_p7 = scmp.lt.s32.totalorder %s1720_s3, %s1720_s3 }
 0x752   :  { %p2830_p6 = scmp.ne.s32.totalorder %s1720_s3, %s2829_s15  ;;  %p2835_p8 = scmp.lt.s32.totalorder %s2829_s15, %s2829_s15 }
 0x753   :  { %v1346_v42 = vmax.f32 %v1344_v35, %v1345_v38  ;;  %v1748_v35 = vld [vmem:[%s3980_s6] ss:$0 sm:$0xff] }
 0x754   :  { %p2836_p9 = por %p2835_p8, %p2834_p7 }
 0x755   :  { %2129 = vmatmul.mubr.msk.f32.vlgmr.msra.gmra.mrb[12].mxu1 %vm1356_vm4, %v1346_v42 }
 0x756   :  { %2474 = vmatpush3.bf16.msra.mxu1 %v2473_v41  ;;  %2147 = vmatprep.mubr.msk.f32.mxu1 %vm2883_vm0, %v2884_v1  ;;  %p2837_p10 = pnand %p2836_p9, %p2830_p6 }
 0x757   :  { %2475 = vmatprep.subr.bf16.mxu1 %v2882_v0 }
 0x75a   :  { %2477 = vmatpush3.bf16.msra.mxu1 %v2476_v47 }
 0x75b   :  { %2478 = vmatprep.subr.bf16.mxu1 %v2882_v0 }
 0x75e   :  { %2480 = vmatpush3.bf16.msra.mxu1 %v2479_v7 }
 0x75f   :  { %2481 = vmatprep.subr.bf16.mxu1 %v2882_v0 }
 0x762   :  { %2483 = vmatpush3.bf16.msra.mxu1 %v2482_v18 }
 0x763   :  { %2508 = vmatprep.subr.bf16.mxu1 %v2882_v0 }
 0x828   :  { %v1426_v63 = vpop.f32.mrb[12].mxu1 }
 0x829   :  { %v1427_v2 = vadd.f32 %v1744_v62, %v1426_v63  ;;  %v2130_v3 = vpop.f32.mrb[13].mxu1 }
 0x82b   :  { %v1430_v50 = vmul.f32 0.01, %v1427_v2 }
 0x82d   :  { %v1431_v54 = vmax.f32 %v1427_v2, %v1430_v50 }
 0x82f   :  { %2148 = vmatmul.mubr.msk.f32.vlgmr.msra.gmra.mrb[14].mxu1 %vm1092_vm3, %v1431_v54 }
 0x830   :  { %2201 = vmatprep.mubr.msk.f32.mxu1 %vm2883_vm0, %v2884_v1  ;;  %v1537_v1 = vld [vmem:[%s3947_s19 + $0x78] sm:$0xff]  ;;  %2510 = vmatpush3.bf16.msra.mxu1 %v2509_v11 }
 0x831   :  { %v2506_v6 = vpack.c.bf16 %v1537_v1, %v1536_v4  ;;  %2511 = vmatprep.subr.bf16.mxu1 %v2882_v0 }
 0x833   :  { %2507 = vmatpush3.bf16.msra.mxu0 %v2506_v6 }
 0x834   :  { %2513 = vmatpush3.bf16.msra.mxu1 %v2512_v15 }
 0x835   :  { %2514 = vmatprep.subr.bf16.mxu1 %v2882_v0 }
 0x838   :  { %2516 = vmatpush3.bf16.msra.mxu1 %v2515_v28 }
 0x839   :  { %2517 = vmatprep.subr.bf16.mxu1 %v2882_v0  ;;  %v1749_v0 = vld [vmem:[%s3981_s25] ss:$0 sm:$0xff] }
 0x83c   :  { %2519 = vmatpush3.bf16.msra.mxu1 %v2518_v33 }
 0x902   :  { %v1516_v17 = vpop.f32.mrb[14].mxu1 }
 0x903   :  { %v1517_v20 = vadd.f32 %v1746_v16, %v1516_v17  ;;  %v2149_v21 = vpop.f32.mrb[15].mxu1 }
 0x905   :  { %v1520_v22 = vmul.f32 0.01, %v1517_v20 }
 0x907   :  { %v1521_v23 = vmax.f32 %v1517_v20, %v1520_v22 }
 0x909   :  { %2183 = vmatmul.mubr.f32.vlgmr.msra.gmra.mrb[12].mxu0 %v1521_v23 }
 0x9dc   :  { %v1611_v34 = vpop.f32.mrb[12].mxu0 }
 0x9dd   :  { %v1612_v39 = vadd.f32 %v1748_v35, %v1611_v34  ;;  %v2184_v38 = vpop.f32.mrb[13].mxu0 }
 0x9df   :  { %v1615_v41 = vmul.f32 0.01, %v1612_v39 }
 0x9e1   :  { %v1616_v42 = vmax.f32 %v1612_v39, %v1615_v41 }
 0x9e3   :  { %2202 = vmatmul.mubr.msk.f32.vlgmr.msra.gmra.mrb[16].mxu1 %vm1092_vm3, %v1616_v42 }
 0xab6   :  { %v1701_v44 = vpop.f32.mrb[16].mxu1 }
 0xab7   :  { %v1702_v45 = vadd.f32 %v1749_v0, %v1701_v44  ;;  %v2203_v47 = vpop.f32.mrb[17].mxu1 }
 0xab9   :  { %v1705_v48 = vsub.f32 0.0, %v1702_v45 }
 0xabb   :  { %v1706_v5 = vmul.f32 1.442695, %v1705_v48 }
 0xabd   :  { %2539 = vpow2.f32 %v1706_v5 }
 0xac7   :  { %v2540_v7 = vpop.eup %2539 }
 0xac8   :  { %v1708_v12 = vadd.f32 0.5, %v2540_v7 }
 0xaca   :  { %2541 = vrcp.f32 %v1708_v12 }
 0xad4   :  { %v2542_v13 = vpop.eup %2541 }
 0xad5   :  { %1712 = vst.msk [vmem:[#allocation23] sm:$0xff] %vm1711_vm5, %v2542_v13 }
 0xad6   :  { %2840 = shalt.err (!%p2837_p10)
}
 0xad7   :  { %s3982_s17 = sld [smem:[#allocation42_spill]] }
 0xadd   :  { %s2841_s28 = scalar_lea.hbm %s3982_s17, 128 }
 0xade   :  { %p2842_p11 = scmp.ne.s32.totalorder %s3982_s17, %s2841_s28  ;;  %p2845_p12 = scmp.lt.u32.totalorder %s2841_s28, %s3982_s17 }
 0xae0   :  { %p2847_p13 = pnand %p2845_p12, %p2842_p11 }
 0xae2   :  { %2850 = shalt.err (!%p2847_p13)
}
 0xae3   :  { %1722 = dma.vmem_to_hbm [thread:$0]  %s1720_s3, 128, %s3982_s17, [#allocation4]  }
 0xae4   :  { %2865 = dma.done.wait [#allocation4], 128  }
 0xae5   :  { %2866 = vsyncadd [#allocation4], 4294967168 }
 0xae6   :  { %1726 = vsyncpa [#allocation3], 1 }
 0xae7   :  { %1727 = vsyncpa [#allocation6], 1 }
 0xae8   :  { %1728 = vsyncpa [#allocation9], 1 }
 0xae9   :  { %1729 = vsyncpa [#allocation12], 1 }
 0xaea   :  { %1730 = vsyncpa [#allocation15], 1 }
 0xaeb   :  { %1731 = vsyncpa [#allocation18], 1 }
 0xaec   :  { %1732 = vsyncpa [#allocation21], 1 }
 0xaed   :  { %1733 = vsyncpa [#allocation4], 1 }

</bundles_post_ra>
